<compile_context>
chip_gen: v7x
topology: tpu7x:2x2x1
jax: 0.10.0
libtpu: 0.0.40
codegen_flags: <defaults>
</compile_context>

<pallas_src>
import functools

import jax
import jax.numpy as jnp
from jax.experimental import pallas as pl
from jax.experimental.pallas import tpu as pltpu


def _round_up(x, m):
    return (x + m - 1) // m * m


def _device_kind():
    try:
        return jax.devices()[0].device_kind.lower()
    except Exception:  # pragma: no cover - defensive only
        return ""


# ------------- Kernel 1: fused q/k projection head + normalize --------------
def encoder_head_kernel(x_ref, w1_ref, b1_ref, w2_ref, b2_ref,
                        q_ref, k_ref, acc_ref, *, np_rows):
    j = pl.program_id(0)

    @pl.when(j == 0)
    def _():
        acc_ref[...] = jnp.zeros_like(acc_ref)

    # hidden tile: h_j = relu(x @ W1[:, j*th:(j+1)*th] + b1_j)  (bf16 MXU, f32 acc)
    h = jnp.dot(x_ref[...], w1_ref[...], preferred_element_type=jnp.float32)
    h = jnp.maximum(h + b1_ref[...], 0.0)
    # partial contribution to the projected features
    acc_ref[...] += jnp.dot(h.astype(jnp.bfloat16), w2_ref[...],
                            preferred_element_type=jnp.float32)

    @pl.when(j == pl.num_programs(0) - 1)
    def _():
        y = acc_ref[...] + b2_ref[...]
        # F.normalize(y, dim=1): y / max(||y||, eps)  (rsqrt -> EUP slot)
        sumsq = jnp.sum(y * y, axis=1, keepdims=True)
        yn = y * jax.lax.rsqrt(jnp.maximum(sumsq, 1e-24))
        q_ref[...] = yn[:np_rows].astype(q_ref.dtype)   # bf16, MXU-ready
        k_ref[...] = yn[np_rows:].astype(k_ref.dtype)   # f32 for the API


def encoder_heads(x_all, w1, b1, w2, b2, *, np_rows, th):
    """x_all: (2*np_rows, D) bf16, first half = q features, second half = k.
    Returns (q_n (np_rows, CP) bf16, k_n (np_rows, CP) f32), both L2-normalized."""
    M, D = x_all.shape
    H = w1.shape[1]
    CP = w2.shape[1]
    th = min(th, H)
    assert H % th == 0 and M == 2 * np_rows
    kern = functools.partial(encoder_head_kernel, np_rows=np_rows)
    flops = 2 * M * D * H + 2 * M * H * CP
    bytes_accessed = ((M * D + D * H + H * CP) * 2      # bf16 x, W1, W2
                      + (H + CP) * 4                    # biases
                      + np_rows * CP * (2 + 4))         # bf16 q + f32 k out
    return pl.pallas_call(
        kern,
        out_shape=(jax.ShapeDtypeStruct((np_rows, CP), jnp.bfloat16),
                   jax.ShapeDtypeStruct((np_rows, CP), jnp.float32)),
        grid_spec=pltpu.PrefetchScalarGridSpec(
            num_scalar_prefetch=0,
            grid=(H // th,),
            in_specs=[
                pl.BlockSpec((M, D), lambda j: (0, 0)),    # x (resident)
                pl.BlockSpec((D, th), lambda j: (0, j)),   # W1 column tile
                pl.BlockSpec((1, th), lambda j: (0, j)),   # b1 tile
                pl.BlockSpec((th, CP), lambda j: (j, 0)),  # W2 row tile
                pl.BlockSpec((1, CP), lambda j: (0, 0)),   # b2 (resident)
            ],
            out_specs=[
                pl.BlockSpec((np_rows, CP), lambda j: (0, 0)),
                pl.BlockSpec((np_rows, CP), lambda j: (0, 0)),
            ],
            scratch_shapes=[pltpu.VMEM((M, CP), jnp.float32)],
        ),
        compiler_params=pltpu.CompilerParams(
            dimension_semantics=("arbitrary",),   # H is a carried reduction
            vmem_limit_bytes=32 * 1024 * 1024),
        cost_estimate=pl.CostEstimate(flops=flops, transcendentals=M,
                                      bytes_accessed=bytes_accessed),
    )(x_all, w1, b1, w2, b2)


# ------------- Kernel 2: fused logits [pos | neg], tiled over the queue -----
def moco_logits_kernel(q_ref, k_ref, queue_ref, o_ref, *, inv_t):
    j = pl.program_id(0)
    # queue is pre-shifted (leading all-zero column), so every tile is a plain
    # lane-dense bf16 matmul; 1/t folded in.
    neg = jnp.dot(q_ref[...], queue_ref[...],
                  preferred_element_type=jnp.float32) * inv_t

    @pl.when(j == 0)
    def _():
        # lane 0 of tile 0 corresponds to the zero column -> patch in the
        # positive logits <q_i, k_i>/t while q/k are VMEM resident.
        pos = (jnp.sum(q_ref[...].astype(jnp.float32) * k_ref[...],
                       axis=1, keepdims=True) * inv_t)
        lane = jax.lax.broadcasted_iota(jnp.int32, neg.shape, 1)
        o_ref[...] = jnp.where(lane == 0, pos, neg).astype(o_ref.dtype)

    @pl.when(j != 0)
    def _():
        o_ref[...] = neg.astype(o_ref.dtype)


def moco_logits(q_bf, k_f32, queue_shift, *, inv_t, tk_max=8192,
                core_parallel=False):
    """q_bf: (NP, CP) bf16, k_f32: (NP, CP) f32, queue_shift: (CP, LP) bf16
    with column 0 all-zero.  Returns (NP, LP) f32 logits = [pos | neg] / t."""
    NP, CP = q_bf.shape
    LP = queue_shift.shape[1]
    assert LP % 128 == 0, "shifted queue must be lane-padded to 128"
    tk = min(tk_max, LP)
    while LP % tk:
        tk -= 128
    assert tk >= 128 and LP % tk == 0
    nkt = LP // tk
    # v7x: shard queue tiles across the two TensorCores.
    dim_sem = ((pltpu.CORE_PARALLEL,) if (core_parallel and nkt > 1)
               else ("parallel",))
    kern = functools.partial(moco_logits_kernel, inv_t=inv_t)
    flops = 2 * NP * CP * LP
    bytes_accessed = CP * LP * 2 + NP * CP * (2 + 4) + NP * LP * 4
    return pl.pallas_call(
        kern,
        out_shape=jax.ShapeDtypeStruct((NP, LP), jnp.float32),
        grid_spec=pltpu.PrefetchScalarGridSpec(
            num_scalar_prefetch=0,
            grid=(nkt,),
            in_specs=[
                pl.BlockSpec((NP, CP), lambda k: (0, 0)),  # q bf16 (resident)
                pl.BlockSpec((NP, CP), lambda k: (0, 0)),  # k f32 (resident)
                pl.BlockSpec((CP, tk), lambda k: (0, k)),  # queue column tile
            ],
            out_specs=pl.BlockSpec((NP, tk), lambda k: (0, k)),
        ),
        compiler_params=pltpu.CompilerParams(
            dimension_semantics=dim_sem,
            vmem_limit_bytes=32 * 1024 * 1024),
        cost_estimate=pl.CostEstimate(flops=flops, transcendentals=0,
                                      bytes_accessed=bytes_accessed),
    )(q_bf, k_f32, queue_shift)


# ----------------------------- preparation (once per training run) ----------
def moco_prepare(params, queue, *, feature_dim):
    """One-time conversion: bf16 weights, lane-padded feature dim, and the
    queue laid out persistently as bf16 (CP, 1 + K padded to 128) with an
    all-zero leading column (the 'pos' slot of the fused logits kernel).
    In training, keep these buffers live across steps (the queue enqueue
    writes into columns 1..K of this buffer) instead of re-casting/padding
    every forward."""
    C = feature_dim
    CP = _round_up(C, 128)
    K = queue.shape[1]
    LP = _round_up(1 + K, 128)
    bf = jnp.bfloat16
    return {
        "w1": params["w1"].astype(bf),
        "b1": params["b1"].astype(jnp.float32),
        "w2": jnp.pad(params["w2"], ((0, 0), (0, CP - C))).astype(bf),
        "b2": jnp.pad(params["b2"], ((0, 0), (0, CP - C))).astype(jnp.float32),
        "queue": jnp.pad(queue, ((0, CP - C), (1, LP - 1 - K))).astype(bf),
        "C": C, "CP": CP, "K": K, "LP": LP,
    }


# ----------------------------- MOCO forward --------------------------------
def moco_forward(q_feat, k_feat, prep, *, t, th=None, core_parallel=None):
    """q_feat/k_feat: (N, 2048) pooled backbone features.  prep: moco_prepare()
    output.  Returns (logits (N, 1+K) f32 already divided by t, k_n (N, C) f32)."""
    # TODO(synk): f_k normally carries its own EMA-updated weights after
    # momentum_update(); sharing one parameter set matches the module at step 0.
    N, D = q_feat.shape
    C, K = prep["C"], prep["K"]
    NP = _round_up(N, 8)       # sublane multiple
    inv_t = 1.0 / t

    kind = _device_kind()
    if th is None:
        # v5e: head is MXU-bound -> fewer, bigger W1 tiles; v6e/v7x: stream-bound.
        th = 1024 if "v5" in kind else 512
    if core_parallel is None:
        core_parallel = ("v7" in kind)

    bf = jnp.bfloat16
    # Stack q and k into one padded batch so W1/W2 stream from HBM only once.
    x_all = jnp.concatenate(
        [jnp.pad(q_feat, ((0, NP - N), (0, 0))),
         jnp.pad(k_feat, ((0, NP - N), (0, 0)))], axis=0).astype(bf)

    q_bf, k_n = encoder_heads(x_all, prep["w1"], prep["b1"],
                              prep["w2"], prep["b2"], np_rows=NP, th=th)
    logits = moco_logits(q_bf, k_n, prep["queue"], inv_t=inv_t,
                         core_parallel=core_parallel)      # (NP, LP), fused [pos|neg]
    return logits[:N, :1 + K], k_n[:N, :C]


# ----------------------------- reference (plain JAX) ------------------------
def moco_forward_ref(q_feat, k_feat, queue, params, *, t):
    """Mirrors the kernel numerics (bf16 MXU inputs, f32 accumulation)."""
    bf = jnp.bfloat16

    def head(x):
        h = jnp.dot(x.astype(bf), params["w1"].astype(bf),
                    preferred_element_type=jnp.float32)
        h = jnp.maximum(h + params["b1"], 0.0)
        y = jnp.dot(h.astype(bf), params["w2"].astype(bf),
                    preferred_element_type=jnp.float32) + params["b2"]
        n2 = jnp.sum(y * y, axis=1, keepdims=True)
        return y * jax.lax.rsqrt(jnp.maximum(n2, 1e-24))

    qn, kn = head(q_feat), head(k_feat)
    qb = qn.astype(bf).astype(jnp.float32)
    pos = jnp.sum(qb * kn, axis=1, keepdims=True)
    neg = jnp.dot(qn.astype(bf), queue.astype(bf),
                  preferred_element_type=jnp.float32)
    return jnp.concatenate([pos, neg], axis=1) / t, kn


if __name__ == "__main__":
    # Small, deterministic shapes.
    N = 2            # batch
    D = 2048         # resnext50 pooled feature dim (fixed by the module head)
    H = 2048         # hidden dim of the projection head
    C = 32           # feature_dim
    K = 64           # queue length
    t = 0.07         # temperature
    m = 0.999        # momentum (unused in forward)

    key = jax.random.PRNGKey(0)
    k_q, k_k, k_queue, k_w1, k_b1, k_w2, k_b2 = jax.random.split(key, 7)

    q_feat = jax.random.normal(k_q, (N, D), dtype=jnp.float32)
    k_feat = jax.random.normal(k_k, (N, D), dtype=jnp.float32)
    queue = jax.random.normal(k_queue, (C, K), dtype=jnp.float32)
    queue = queue / jnp.linalg.norm(queue, axis=0, keepdims=True)

    params = {
        "w1": jax.random.normal(k_w1, (D, H), dtype=jnp.float32) / jnp.sqrt(D),
        "b1": jax.random.normal(k_b1, (1, H), dtype=jnp.float32) * 0.01,
        "w2": jax.random.normal(k_w2, (H, C), dtype=jnp.float32) / jnp.sqrt(H),
        "b2": jax.random.normal(k_b2, (1, C), dtype=jnp.float32) * 0.01,
    }

    # One-time preparation (persists across training steps in real use).
    prep = moco_prepare(params, queue, feature_dim=C)

    logits, k_out = moco_forward(q_feat, k_feat, prep, t=t)
    logits = jax.block_until_ready(logits)
    k_out = jax.block_until_ready(k_out)

    logits_ref, k_ref = moco_forward_ref(q_feat, k_feat, queue, params, t=t)
    assert logits.shape == (N, 1 + K) and k_out.shape == (N, C)
    assert jnp.allclose(logits, logits_ref, atol=3e-2, rtol=2e-2), \
        float(jnp.max(jnp.abs(logits - logits_ref)))
    assert jnp.allclose(k_out, k_ref, atol=5e-3, rtol=5e-3), \
        float(jnp.max(jnp.abs(k_out - k_ref)))

    print("KERNEL_OK")
</pallas_src>

<mosaic_0001>
module attributes {stable_mosaic.version = 11 : i64} {
  func.func @encoder_head_kernel(%arg0: i32, %arg1: memref<16x2048xbf16, #tpu.memory_space<vmem>>, %arg2: memref<2048x512xbf16, #tpu.memory_space<vmem>>, %arg3: memref<1x512xf32, #tpu.memory_space<vmem>>, %arg4: memref<512x128xbf16, #tpu.memory_space<vmem>>, %arg5: memref<1x128xf32, #tpu.memory_space<vmem>>, %arg6: memref<8x128xbf16, #tpu.memory_space<vmem>>, %arg7: memref<8x128xf32, #tpu.memory_space<vmem>>, %arg8: memref<16x128xf32, #tpu.memory_space<vmem>>) attributes {dimension_semantics = [#tpu.dimension_semantics<arbitrary>], iteration_bounds = array<i64: 4>, scalar_prefetch = 0 : i64, scratch_operands = 1 : i64, tpu.core_type = #tpu.core_type<tc>, window_params = [{pipeline_mode = #tpu.pipeline_mode<synchronous>, transform_indices = @transform_0, window_bounds = array<i64: 16, 2048>}, {transform_indices = @transform_1, window_bounds = array<i64: 2048, 512>}, {transform_indices = @transform_2, window_bounds = array<i64: 1, 512>}, {transform_indices = @transform_3, window_bounds = array<i64: 512, 128>}, {pipeline_mode = #tpu.pipeline_mode<synchronous>, transform_indices = @transform_4, window_bounds = array<i64: 1, 128>}, {pipeline_mode = #tpu.pipeline_mode<synchronous>, transform_indices = @transform_5, window_bounds = array<i64: 8, 128>}, {pipeline_mode = #tpu.pipeline_mode<synchronous>, transform_indices = @transform_6, window_bounds = array<i64: 8, 128>}]} {
    %c0_i32 = arith.constant 0 : i32
    %0 = arith.cmpi eq, %arg0, %c0_i32 : i32
    %1 = arith.extui %0 : i1 to i32
    %c0_i32_0 = arith.constant 0 : i32
    %2 = arith.cmpi ne, %1, %c0_i32_0 : i32
    scf.if %2 {
      %cst_15 = arith.constant 0.000000e+00 : f32
      %20 = vector.broadcast %cst_15 : f32 to vector<16x128xf32>
      %c0_16 = arith.constant 0 : index
      %c0_17 = arith.constant 0 : index
      %21 = vector.load %arg8[%c0_16, %c0_17] : memref<16x128xf32, #tpu.memory_space<vmem>>, vector<16x128xf32>
      tpu.vector_store %arg8[%c0_16, %c0_17], %20 {strides = array<i32>} : memref<16x128xf32, #tpu.memory_space<vmem>>, vector<16x128xf32>,
    } else {
    }
    %c0 = arith.constant 0 : index
    %c0_1 = arith.constant 0 : index
    %3 = vector.load %arg1[%c0, %c0_1] : memref<16x2048xbf16, #tpu.memory_space<vmem>>, vector<16x2048xbf16>
    %c0_2 = arith.constant 0 : index
    %c0_3 = arith.constant 0 : index
    %4 = vector.load %arg2[%c0_2, %c0_3] : memref<2048x512xbf16, #tpu.memory_space<vmem>>, vector<2048x512xbf16>
    %cst = arith.constant dense<0.000000e+00> : vector<16x512xf32>
    %5 = tpu.matmul %3, %4, %cst {dimension_numbers = #tpu.dot_dimension_numbers<[1], [0], [0], [1], [0, 0, 1, 1], [], []>} : vector<16x2048xbf16>, vector<2048x512xbf16>, vector<16x512xf32> -> vector<16x512xf32>
    %c0_4 = arith.constant 0 : index
    %c0_5 = arith.constant 0 : index
    %6 = vector.load %arg3[%c0_4, %c0_5] : memref<1x512xf32, #tpu.memory_space<vmem>>, vector<1x512xf32>
    %7 = vector.broadcast %6 : vector<1x512xf32> to vector<16x512xf32>
    %8 = arith.addf %5, %7 : vector<16x512xf32>
    %cst_6 = arith.constant 0.000000e+00 : f32
    %9 = vector.broadcast %cst_6 : f32 to vector<16x512xf32>
    %10 = arith.maximumf %8, %9 : vector<16x512xf32>
    %c0_7 = arith.constant 0 : index
    %c0_8 = arith.constant 0 : index
    %11 = vector.load %arg8[%c0_7, %c0_8] : memref<16x128xf32, #tpu.memory_space<vmem>>, vector<16x128xf32>
    %12 = arith.truncf %10 : vector<16x512xf32> to vector<16x512xbf16>
    %c0_9 = arith.constant 0 : index
    %c0_10 = arith.constant 0 : index
    %13 = vector.load %arg4[%c0_9, %c0_10] : memref<512x128xbf16, #tpu.memory_space<vmem>>, vector<512x128xbf16>
    %cst_11 = arith.constant dense<0.000000e+00> : vector<16x128xf32>
    %14 = tpu.matmul %12, %13, %cst_11 {dimension_numbers = #tpu.dot_dimension_numbers<[1], [0], [0], [1], [0, 0, 1, 1], [], []>} : vector<16x512xbf16>, vector<512x128xbf16>, vector<16x128xf32> -> vector<16x128xf32>
    %15 = arith.addf %11, %14 : vector<16x128xf32>
    %c0_12 = arith.constant 0 : index
    %c0_13 = arith.constant 0 : index
    %16 = vector.load %arg8[%c0_12, %c0_13] : memref<16x128xf32, #tpu.memory_space<vmem>>, vector<16x128xf32>
    tpu.vector_store %arg8[%c0_12, %c0_13], %15 {strides = array<i32>} : memref<16x128xf32, #tpu.memory_space<vmem>>, vector<16x128xf32>,
    %c3_i32 = arith.constant 3 : i32
    %17 = arith.cmpi eq, %arg0, %c3_i32 : i32
    %18 = arith.extui %17 : i1 to i32
    %c0_i32_14 = arith.constant 0 : i32
    %19 = arith.cmpi ne, %18, %c0_i32_14 : i32
    scf.if %19 {
      %c0_15 = arith.constant 0 : index
      %c0_16 = arith.constant 0 : index
      %20 = vector.load %arg8[%c0_15, %c0_16] : memref<16x128xf32, #tpu.memory_space<vmem>>, vector<16x128xf32>
      %c0_17 = arith.constant 0 : index
      %c0_18 = arith.constant 0 : index
      %21 = vector.load %arg5[%c0_17, %c0_18] : memref<1x128xf32, #tpu.memory_space<vmem>>, vector<1x128xf32>
      %22 = vector.broadcast %21 : vector<1x128xf32> to vector<16x128xf32>
      %23 = arith.addf %20, %22 : vector<16x128xf32>
      %24 = arith.mulf %23, %23 : vector<16x128xf32>
      %cst_19 = arith.constant dense<0.000000e+00> : vector<16xf32>
      %25 = vector.multi_reduction <add>, %24, %cst_19 [1] : vector<16x128xf32> to vector<16xf32>
      %26 = vector.shape_cast %25 : vector<16xf32> to vector<16x1xf32>
      %cst_20 = arith.constant 1.000000e-24 : f32
      %27 = vector.broadcast %cst_20 : f32 to vector<16x1xf32>
      %28 = arith.maximumf %26, %27 : vector<16x1xf32>
      %29 = math.rsqrt %28 : vector<16x1xf32>
      %30 = vector.broadcast %29 : vector<16x1xf32> to vector<16x128xf32>
      %31 = arith.mulf %23, %30 : vector<16x128xf32>
      %32 = vector.extract_strided_slice %31 {offsets = [0, 0], sizes = [8, 128], strides = [1, 1]} : vector<16x128xf32> to vector<8x128xf32>
      %33 = arith.truncf %32 : vector<8x128xf32> to vector<8x128xbf16>
      %c0_21 = arith.constant 0 : index
      %c0_22 = arith.constant 0 : index
      %34 = vector.load %arg6[%c0_21, %c0_22] : memref<8x128xbf16, #tpu.memory_space<vmem>>, vector<8x128xbf16>
      tpu.vector_store %arg6[%c0_21, %c0_22], %33 {strides = array<i32>} : memref<8x128xbf16, #tpu.memory_space<vmem>>, vector<8x128xbf16>,
      %35 = vector.extract_strided_slice %31 {offsets = [8, 0], sizes = [8, 128], strides = [1, 1]} : vector<16x128xf32> to vector<8x128xf32>
      %c0_23 = arith.constant 0 : index
      %c0_24 = arith.constant 0 : index
      %36 = vector.load %arg7[%c0_23, %c0_24] : memref<8x128xf32, #tpu.memory_space<vmem>>, vector<8x128xf32>
      tpu.vector_store %arg7[%c0_23, %c0_24], %35 {strides = array<i32>} : memref<8x128xf32, #tpu.memory_space<vmem>>, vector<8x128xf32>,
    } else {
    }
    return
  }
  func.func @transform_0(%arg0: i32) -> (i32, i32) {
    %c0_i32 = arith.constant 0 : i32
    %c0_i32_0 = arith.constant 0 : i32
    %c0_i32_1 = arith.constant 0 : i32
    return %c0_i32, %c0_i32_0 : i32, i32
  }
  func.func @transform_1(%arg0: i32) -> (i32, i32) {
    %c0_i32 = arith.constant 0 : i32
    %c0_i32_0 = arith.constant 0 : i32
    return %c0_i32, %arg0 : i32, i32
  }
  func.func @transform_2(%arg0: i32) -> (i32, i32) {
    %c0_i32 = arith.constant 0 : i32
    %c0_i32_0 = arith.constant 0 : i32
    return %c0_i32, %arg0 : i32, i32
  }
  func.func @transform_3(%arg0: i32) -> (i32, i32) {
    %c0_i32 = arith.constant 0 : i32
    %c0_i32_0 = arith.constant 0 : i32
    return %arg0, %c0_i32 : i32, i32
  }
  func.func @transform_4(%arg0: i32) -> (i32, i32) {
    %c0_i32 = arith.constant 0 : i32
    %c0_i32_0 = arith.constant 0 : i32
    %c0_i32_1 = arith.constant 0 : i32
    return %c0_i32, %c0_i32_0 : i32, i32
  }
  func.func @transform_5(%arg0: i32) -> (i32, i32) {
    %c0_i32 = arith.constant 0 : i32
    %c0_i32_0 = arith.constant 0 : i32
    %c0_i32_1 = arith.constant 0 : i32
    return %c0_i32, %c0_i32_0 : i32, i32
  }
  func.func @transform_6(%arg0: i32) -> (i32, i32) {
    %c0_i32 = arith.constant 0 : i32
    %c0_i32_0 = arith.constant 0 : i32
    %c0_i32_1 = arith.constant 0 : i32
    return %c0_i32, %c0_i32_0 : i32, i32
  }
}

</mosaic_0001>

<bundles_post_ra>
// kernel: tpu_custom_call.1
= control target key start
LH: loop header
LB: loop body
LE: loop exit
PB: predicated region body
PF: predicated region fallthrough
CT: control target
= control target key end

     0   :  { %s7577_s0 = inlined_call_operand.hbm [shape: bf16[16,2048], index: 0, kind: input, shape index: {}]   ;;  %s7578_s1 = inlined_call_operand.hbm [shape: bf16[2048,2048], index: 1, kind: input, shape index: {}]   ;;  %s7579_s2 = inlined_call_operand.hbm [shape: f32[1,2048], index: 2, kind: input, shape index: {}]   ;;  %s7580_s3 = inlined_call_operand.hbm [shape: bf16[2048,128], index: 3, kind: input, shape index: {}]   ;;  %s7581_s4 = inlined_call_operand.hbm [shape: f32[1,128], index: 4, kind: input, shape index: {}]   ;;  %s7582_s5 = inlined_call_operand.hbm [shape: bf16[8,128], index: 5, kind: output, shape index: {0}]   ;;  %s7583_s6 = inlined_call_operand.hbm [shape: f32[8,128], index: 6, kind: output, shape index: {1}]  }
   0x1   :  { %7596 = sst [smem:[#allocation23_spill]] %s7578_s1 }
   0x2   :  { %7597 = sst [smem:[#allocation24_spill]] %s7581_s4 }
   0x3   :  { %12 = vsyncpa [#allocation4], 0 }
   0x4   :  { %13 = vsyncpa [#allocation7], 0 }
   0x5   :  { %15 = vsyncpa [#allocation7 + $0x1], 0 }
   0x6   :  { %16 = vsyncpa [#allocation10], 0 }
   0x7   :  { %18 = vsyncpa [#allocation10 + $0x1], 0 }
   0x8   :  { %19 = vsyncpa [#allocation5], 0 }
   0x9   :  { %20 = vsyncpa [#allocation14], 0  ;;  %s6672_s21 = smov 0   ;;  %s6674_s22 = smov 0  }
   0xa   :  { %s6676_s23 = smov 0   ;;  %s6678_s24 = smov 0  }
   0xb LB: > { %7598 = sst [smem:[#allocation21_spill]] %s6618_s23  ;;  %s6691_s25 = sadd.s32 4294967295, %s6622_s24   ;;  %s6622_s24 = sphi %s6678_s24, %s7626_s24   ;;  %s6618_s23 = sphi %s6676_s23, %s7623_s23   ;;  %s6614_s22 = sphi %s6674_s22, %s7625_s22   ;;  %s6610_s21 = sphi %s6672_s21, %s7624_s21  }
   0xc   : > { %s6694_s26 = sadd.s32 1, %s6622_s24   ;;  %s54_s28 = sadd.s32 1, %s6618_s23 }
   0xd   : > { %s51_s27 = ssub.s32 %s6622_s24, %s6694_s26  ;;  %p61_p1 = scmp.ne.s32.totalorder %s6618_s23, %s6614_s22 }
   0xe   : > { %p52_p0 = scmp.eq.s32.totalorder %s51_s27, 0  ;;  %p62_p2 = scmp.eq.s32.totalorder %s6622_s24, 0 }
   0xf   : > { %p67_p3 = scmp.ne.s32.totalorder %s6614_s22, %s6610_s21  ;;  %p7584_p5 = scmp.eq.s32.totalorder %s6691_s25, 0 }
  0x10   : > { %s6704_s29 = scalar_select %p52_p0, %s6618_s23, %s54_s28  }
  0x11   : > { %p6706_p4 = por %p62_p2, %p61_p1  ;;  %p4777_p6 = scmp.ge.s32.totalorder %s6622_s24, 1 }
  0x12   : > { %7599 = sst [smem:[#allocation22_spill]] %s6704_s29  ;;  %p193_p7 = scmp.lt.s32.totalorder %s6622_s24, 5 }
  0x13   : > { %p6715_p8 = por %p7584_p5, %p67_p3  ;;  %s6624_s9 = smov [#allocation11]  }
  0x14   : > { %p6720_p10 = pnand %p4777_p6, %p193_p7  ;;  %s219_s10 = sshll.u32 %s6624_s9, 4  ;;  %s220_s10 = int_to_ptr.vmem [resolvable:$true] %s219_s10 }
  0x15   : > { %s7601_s7 = scalar_select %p6715_p8, 1, 0 }
  0x16   : > { %s7602_s8 = scalar_select %p6720_p10, 1, 0 }
  0x17   : > { %p5498_p11 = pneg %p6720_p10  ;;  %p5517_p12 = scmp.lt.s32.totalorder %s6622_s24, 4 }
  0x18   : > { %s7591_s12 = sand.u32 1, %s6622_s24   ;;  %s6741_s14 = sand.u32 1, %s6618_s23  }
  0x19   : > { %p6729_p13 = pnand %p5498_p11, %p7584_p5  ;;  %p6736_p0 = pnand %p5517_p12, %p6706_p4 }
  0x1a   : > { %s7605_s4 = sld [smem:[#allocation24_spill]] }
  0x1b   : > { %s7603_s11 = scalar_select %p6729_p13, 1, 0 }
  0x1c   : > { %s7604_s13 = scalar_select %p6736_p0, 1, 0 }
  0x1d   : > { %p7588_p2 = pneg %p6729_p13 }
  0x20   : > { %s6370_s17 = scalar_lea.hbm %s7605_s4, 16 }
  0x21   : > { %p6371_p1 = scmp.ne.s32.totalorder %s7605_s4, %s6370_s17  ;;  %p6377_p4 = scmp.lt.u32.totalorder %s6370_s17, %s7605_s4 }
  0x23   : > { %p6373_p3 = pnand %p7588_p2, %p6371_p1 }
  0x25   : > { %p6374_p6 = pneg %p6373_p3 }
  0x27   : > { %p6379_p7 = pnand %p6377_p4, %p6374_p6 }
  0x29   : > { %6382 = shalt.err (!%p6379_p7)
}
  0x2a   : > { %s6383_s27 = scalar_lea.vmem %s220_s10, 16  ;;  %s6390_s28 = scalar_lea.vmem %s220_s10, 32 }
  0x2b   : > { %p6384_p11 = scmp.ne.s32.totalorder %s220_s10, %s6383_s27  ;;  %p6391_p5 = scmp.lt.s32.totalorder %s220_s10, %s220_s10 }
  0x2c   : > { %p6392_p8 = scmp.lt.s32.totalorder %s6390_s28, %s6383_s27 }
  0x2d   : > { %p6386_p12 = pnand %p6384_p11, %p7588_p2 }
  0x2e   : > { %p6393_p10 = por %p6392_p8, %p6391_p5 }
  0x2f   : > { %p6387_p9 = pneg %p6386_p12 }
  0x31   : > { %p6394_p0 = pnand %p6393_p10, %p6387_p9 }
  0x33   : > { %6397 = shalt.err (!%p6394_p0)
}
  0x34   : > { %5504 = dma.hbm_to_vmem [thread:$0]  (!%p6729_p13), %s7605_s4, 16, %s220_s10, [#allocation10]  }
  0x35   : > { %s4781_s15 = sshll.u32 %s6741_s14, 12  ;;  %s5365_s16 = sshll.u32 %s6622_s24, 8 }
  0x36   : > { %s7606_s1 = sld [smem:[#allocation23_spill]]  ;;  %s234_s20 = scalar_lea.vmem [#allocation6], %s4781_s15 }
  0x37   : > { %s241_s21 = sshll.u32 %s234_s20, 4  ;;  %s6776_s27 = scalar_lea.sflag [#allocation7], %s7591_s12  ;;  %s6772_s21 = int_to_ptr.vmem [resolvable:$true] %s241_s21 }
  0x38   : > { %p7607_p8 = scmp.ne.s32.totalorder %s7604_s13, 0 }
  0x3a   : > { %p6782_p9 = pneg %p7607_p8 }
  0x3c   : > { %s6770_s19 = scalar_lea.hbm %s7606_s1, %s5365_s16  ;;  %s6403_s15 = scalar_lea.hbm %s7606_s1, 262144 }
  0x3d   : > { %s6398_s28 = scalar_lea.hbm %s6770_s19, 65536  ;;  %p6404_p1 = scmp.lt.u32.totalorder %s6770_s19, %s7606_s1 }
  0x3e   : > { %p6399_p5 = scmp.ne.s32.totalorder %s6770_s19, %s6398_s28  ;;  %p6405_p3 = scmp.lt.u32.totalorder %s6403_s15, %s6398_s28 }
  0x3f   : > { %s7608_s10 = scalar_select %p6782_p9, 1, 0 }
  0x40   : > { %p6401_p10 = pnand %p6782_p9, %p6399_p5  ;;  %p6406_p6 = por %p6405_p3, %p6404_p1 }
  0x41   : > { %p6407_p4 = scmp.lt.u32.totalorder %s6398_s28, %s6770_s19 }
  0x42   : > { %p6402_p0 = pneg %p6401_p10 }
  0x43   : > { %p6408_p7 = por %p6407_p4, %p6406_p6 }
  0x45   : > { %p6409_p11 = pnand %p6408_p7, %p6402_p0 }
  0x47   : > { %6412 = shalt.err (!%p6409_p11)
}
  0x48   : > { %s6413_s18 = scalar_lea.vmem %s6772_s21, 65536  ;;  %s6625_s20 = smov [#allocation6]  }
  0x49   : > { %p6414_p12 = scmp.ne.s32.totalorder %s6772_s21, %s6413_s18  ;;  %s6418_s30 = sshll.u32 %s6625_s20, 4  ;;  %s6419_s30 = int_to_ptr.vmem [resolvable:$false] %s6418_s30 }
  0x4a   : > { %s6420_s9 = scalar_lea.vmem %s6419_s30, 131072  ;;  %p6421_p2 = scmp.lt.s32.totalorder %s6772_s21, %s6419_s30 }
  0x4b   : > { %p6416_p5 = pnand %p6414_p12, %p6782_p9  ;;  %p6422_p13 = scmp.lt.s32.totalorder %s6420_s9, %s6413_s18 }
  0x4d   : > { %p6417_p10 = pneg %p6416_p5  ;;  %p6423_p1 = por %p6422_p13, %p6421_p2 }
  0x4f   : > { %p6424_p3 = pnand %p6423_p1, %p6417_p10 }
  0x51   : > { %6427 = shalt.err (!%p6424_p3)
}
  0x52   : > { %s6626_s28 = smov 1024   ;;  %s6627_s15 = smov 256  }
  0x53   : > { %s6628_s16 = smov 16   ;;  %s6629_s17 = smov [#allocation3]  }
  0x54   : > { %5508 = dma.hbm_to_vmem [thread:$0]  (!%p7607_p8), %s6770_s19, 65536, %s6772_s21, %s6776_s27, %s6626_s28, %s6627_s15, %s6628_s16  }
  0x55   : > { %s205_s20 = sshll.u32 %s6629_s17, 4  ;;  %s4784_s12 = sshll.u32 %s6741_s14, 2  ;;  %s206_s20 = int_to_ptr.vmem [resolvable:$true] %s205_s20 }
  0x56   : > { %s6428_s9 = scalar_lea.hbm %s7577_s0, 2048  ;;  %p7609_p2 = scmp.ne.s32.totalorder %s7603_s11, 0 }
  0x57   : > { %p6429_p13 = scmp.ne.s32.totalorder %s7577_s0, %s6428_s9  ;;  %p6435_p7 = scmp.lt.u32.totalorder %s6428_s9, %s7577_s0 }
  0x58   : > { %p7610_p0 = pneg %p7609_p2 }
  0x5a   : > { %p6431_p6 = pnand %p6429_p13, %p7610_p0 }
  0x5c   : > { %p6432_p4 = pneg %p6431_p6 }
  0x5e   : > { %p6437_p11 = pnand %p6435_p7, %p6432_p4 }
  0x60   : > { %6440 = shalt.err (!%p6437_p11)
}
  0x61   : > { %s6441_s19 = scalar_lea.vmem %s206_s20, 2048  ;;  %p7611_p5 = pmov %p7610_p0 }
  0x62   : > { %p6442_p12 = scmp.ne.s32.totalorder %s206_s20, %s6441_s19  ;;  %p6449_p3 = scmp.lt.s32.totalorder %s206_s20, %s206_s20 }
  0x63   : > { %p6450_p8 = scmp.lt.s32.totalorder %s6441_s19, %s6441_s19 }
  0x64   : > { %p6444_p10 = pnand %p6442_p12, %p7611_p5 }
  0x65   : > { %p6451_p9 = por %p6450_p8, %p6449_p3 }
  0x66   : > { %p6445_p1 = pneg %p6444_p10 }
  0x68   : > { %p6452_p0 = pnand %p6451_p9, %p6445_p1 }
  0x6a   : > { %6455 = shalt.err (!%p6452_p0)
}
  0x6b   : > { %s6630_s1 = smov 64   ;;  %s5366_s29 = sshll.u32 %s6622_s24, 6 }
  0x6c   : > { %5501 = dma.hbm_to_vmem [thread:$0]  (!%p7609_p2), %s7577_s0, 2048, %s206_s20, [#allocation4], %s6626_s28, %s6626_s28, %s6630_s1  }
  0x6d   : > { %s6832_s16 = scalar_lea.hbm %s7579_s2, %s5366_s29  ;;  %s255_s17 = scalar_lea.vmem [#allocation8], %s4784_s12 }
  0x6e   : > { %s263_s30 = sshll.u32 %s255_s17, 4  ;;  %s6456_s11 = scalar_lea.hbm %s6832_s16, 64  ;;  %s264_s30 = int_to_ptr.vmem [resolvable:$true] %s263_s30 }
  0x6f   : > { %p6457_p8 = scmp.ne.s32.totalorder %s6832_s16, %s6456_s11  ;;  %p7612_p9 = scmp.ne.s32.totalorder %s7608_s10, 0 }
  0x70   : > { %s6461_s20 = scalar_lea.hbm %s7579_s2, 256  ;;  %p6462_p2 = scmp.lt.u32.totalorder %s6832_s16, %s7579_s2 }
  0x71   : > { %p6459_p13 = pnand %p6457_p8, %p7612_p9  ;;  %p6463_p4 = scmp.lt.u32.totalorder %s6461_s20, %s6456_s11 }
  0x72   : > { %p6465_p11 = scmp.lt.u32.totalorder %s6456_s11, %s6832_s16 }
  0x73   : > { %p6460_p6 = pneg %p6459_p13  ;;  %p6464_p7 = por %p6463_p4, %p6462_p2 }
  0x75   : > { %p6466_p12 = por %p6465_p11, %p6464_p7 }
  0x77   : > { %p6467_p5 = pnand %p6466_p12, %p6460_p6 }
  0x79   : > { %6470 = shalt.err (!%p6467_p5)
}
  0x7a   : > { %s6471_s12 = scalar_lea.vmem %s264_s30, 64  ;;  %s6631_s4 = smov [#allocation8]  }
  0x7b   : > { %p6472_p10 = scmp.ne.s32.totalorder %s264_s30, %s6471_s12  ;;  %s6476_s23 = sshll.u32 %s6631_s4, 4  ;;  %s6477_s23 = int_to_ptr.vmem [resolvable:$false] %s6476_s23 }
  0x7c   : > { %s6478_s29 = scalar_lea.vmem %s6477_s23, 128  ;;  %p6479_p0 = scmp.lt.s32.totalorder %s264_s30, %s6477_s23 }
  0x7d   : > { %p6474_p1 = pnand %p6472_p10, %p7612_p9  ;;  %p6480_p8 = scmp.lt.s32.totalorder %s6478_s29, %s6471_s12 }
  0x7f   : > { %p6475_p3 = pneg %p6474_p1  ;;  %p6481_p13 = por %p6480_p8, %p6479_p0 }
  0x81   : > { %p6482_p2 = pnand %p6481_p13, %p6475_p3 }
  0x83   : > { %6485 = shalt.err (!%p6482_p2)
}
  0x84   : > { %p7613_p4 = scmp.ne.s32.totalorder %s7604_s13, 0  ;;  %s4787_s21 = sshll.u32 %s6741_s14, 8 }
  0x85   : > { %s5367_s15 = sshll.u32 %s6622_s24, 12  ;;  %s274_s28 = scalar_lea.vmem [#allocation9], %s4787_s21 }
  0x86   : > { %5511 = dma.hbm_to_vmem [thread:$0]  (!%p7613_p4), %s6832_s16, 64, %s264_s30, %s6776_s27  }
  0x87   : > { %s6857_s18 = scalar_lea.hbm %s7580_s3, %s5367_s15  ;;  %s281_s20 = sshll.u32 %s274_s28, 4  ;;  %s6859_s20 = int_to_ptr.vmem [resolvable:$true] %s281_s20 }
  0x88   : > { %s7614_s9 = sand.u32 1, %s6622_s24   ;;  %s6486_s12 = scalar_lea.hbm %s6857_s18, 4096 }
  0x89   : > { %s6863_s19 = scalar_lea.sflag [#allocation10], %s7614_s9  ;;  %p6487_p6 = scmp.ne.s32.totalorder %s6857_s18, %s6486_s12 }
  0x8a   : > { %s6491_s16 = scalar_lea.hbm %s7580_s3, 16384  ;;  %p6492_p12 = scmp.lt.u32.totalorder %s6857_s18, %s7580_s3 }
  0x8b   : > { %p6489_p7 = pnand %p6487_p6, %p7612_p9  ;;  %p6493_p5 = scmp.lt.u32.totalorder %s6491_s16, %s6486_s12 }
  0x8c   : > { %p6495_p1 = scmp.lt.u32.totalorder %s6486_s12, %s6857_s18 }
  0x8d   : > { %p6490_p11 = pneg %p6489_p7  ;;  %p6494_p10 = por %p6493_p5, %p6492_p12 }
  0x8f   : > { %p6496_p3 = por %p6495_p1, %p6494_p10 }
  0x91   : > { %p6497_p0 = pnand %p6496_p3, %p6490_p11 }
  0x93   : > { %6500 = shalt.err (!%p6497_p0)
}
  0x94   : > { %s6501_s24 = scalar_lea.vmem %s6859_s20, 4096  ;;  %s6632_s23 = smov [#allocation9]  }
  0x95   : > { %p6502_p8 = scmp.ne.s32.totalorder %s6859_s20, %s6501_s24  ;;  %s6506_s29 = sshll.u32 %s6632_s23, 4  ;;  %s6507_s29 = int_to_ptr.vmem [resolvable:$false] %s6506_s29 }
  0x96   : > { %s6508_s21 = scalar_lea.vmem %s6507_s29, 8192  ;;  %p6509_p6 = scmp.lt.s32.totalorder %s6859_s20, %s6507_s29 }
  0x97   : > { %p6504_p13 = pnand %p6502_p8, %p7612_p9  ;;  %p6510_p7 = scmp.lt.s32.totalorder %s6508_s21, %s6501_s24 }
  0x99   : > { %p6505_p2 = pneg %p6504_p13  ;;  %p6511_p12 = por %p6510_p7, %p6509_p6 }
  0x9b   : > { %p6512_p5 = pnand %p6511_p12, %p6505_p2 }
  0x9d   : > { %6515 = shalt.err (!%p6512_p5)
}
  0x9e   : > { %s6633_s15 = smov 4   ;;  %p7615_p9 = scmp.ne.s32.totalorder %s7602_s8, 0 }
  0x9f   : > { %5514 = dma.hbm_to_vmem [thread:$0]  (!%p7613_p4), %s6857_s18, 4096, %s6859_s20, %s6863_s19, %s6630_s1, %s6630_s1, %s6633_s15  }
  0xa0   : > { %293 = sbr.rel (%p7615_p9) target bundleno = 1365 (0x555), region = 40  ;;  %p7616_p11 = scmp.eq.s32.totalorder (!%p7615_p9), %s6691_s25, 0 }
  0xa7   : > { %6585 = dma.done.wait (%p7616_p11), [#allocation4], 2048   ;;  %p7617_p10 = pmov %p7616_p11 }
  0xa8   : > { %s299_s10 = sand.u32 1, %s6691_s25   ;;  %s301_s13 = sand.u32 1, %s6614_s22  }
  0xa9   : > { %6587 = vsyncadd (%p7617_p10), [#allocation4], 4294965248  ;;  %s4792_s17 = sshll.u32 %s301_s13, 12  ;;  %s300_s11 = scalar_lea.sflag [#allocation7], %s299_s10 }
  0xaa   : > { %s6897_s28 = scalar_lea.vmem [#allocation6], %s4792_s17  ;;  %p7618_p1 = scmp.ne.s32.totalorder %s7601_s7, 0 }
  0xac   : > { %6589 = dma.done.wait (%p7618_p1), %s300_s11, 65600  }
  0xad   : > { %6591 = vsyncadd (%p7618_p1), %s300_s11, 4294901696  ;;  %s4793_s8 = sshll.u32 %s301_s13, 2  ;;  %s4794_s1 = sshll.u32 %s301_s13, 8 }
  0xae   : > { %s6903_s18 = scalar_lea.vmem [#allocation8], %s4793_s8  ;;  %s318_s20 = scalar_lea.sflag [#allocation10], %s299_s10 }
  0xaf   : > { %s6905_s9 = scalar_lea.vmem [#allocation9], %s4794_s1 }
  0xb0   : > { %6593 = dma.done.wait (%p7618_p1), %s318_s20, 4096  }
  0xb1   : > { %6595 = vsyncadd (%p7618_p1), %s318_s20, 4294963200  ;;  %p7619_p4 = pmov %p7617_p10 }
  0xb3   : > { %6597 = dma.done.wait (%p7619_p4), [#allocation10], 16   ;;  %p7620_p3 = pmov %p7619_p4 }
  0xb4   : > { %p7621_p0 = scmp.ne.s32.totalorder %s6691_s25, 0 }
  0xb5   : > { %6599 = vsyncadd (%p7620_p3), [#allocation10], 4294967280  ;;  %v6634_v0 = vmov (!%p7621_p0), 0.0  }
  0xb6   : > { %366 = sbr.rel (%p7621_p0) target bundleno = 189 (0xbd), region = 64  ;;  %367 = vst [vmem:[#allocation2] sm:$0xff] (!%p7621_p0), %v6634_v0  ;;  %368 = vst [vmem:[#allocation2 + $0x8] sm:$0xff] (!%p7621_p0), %v6634_v0 }
  0xbd PF: > { %v5566_v1 = vld [vmem:[%s6897_s28 + $0x4] ss:$16 sps:$4 sm:$0xff]   ;;  %v5568_v2 = vld [vmem:[%s6897_s28 + $0xc] ss:$16 sps:$4 sm:$0xff]   ;;  %v5570_v3 = vld [vmem:[%s6897_s28] ss:$16 sps:$4 sm:$0xff]  }
  0xbe   : > { %3559 = vmatprep.subr.bf16.mxu0 %v5566_v1  ;;  %v5571_v4 = vld [vmem:[%s6897_s28 + $0x8] ss:$16 sps:$4 sm:$0xff]   ;;  %3903 = vmatprep.subr.bf16.mxu1 %v5568_v2  ;;  %v5572_v5 = vld [vmem:[%s6897_s28 + $0x24] ss:$16 sps:$4 sm:$0xff]   ;;  %v5574_v6 = vld [vmem:[%s6897_s28 + $0x2c] ss:$16 sps:$4 sm:$0xff]  }
  0xbf   : > { %3560 = vmatpush1.bf16.msra.mxu0 %v5570_v3  ;;  %3904 = vmatpush1.bf16.msra.mxu1 %v5571_v4  ;;  %v5576_v7 = vld [vmem:[%s6897_s28 + $0x20] ss:$16 sps:$4 sm:$0xff]   ;;  %v5577_v8 = vld [vmem:[%s6897_s28 + $0x28] ss:$16 sps:$4 sm:$0xff]   ;;  %v5578_v9 = vld [vmem:[%s6897_s28 + $0x44] ss:$16 sps:$4 sm:$0xff]  }
  0xc0   : > { %3561 = vmatprep.subr.bf16.mxu0 %v5572_v5  ;;  %3905 = vmatprep.subr.bf16.mxu1 %v5574_v6  ;;  %v5580_v10 = vld [vmem:[%s6897_s28 + $0x4c] ss:$16 sps:$4 sm:$0xff]   ;;  %v5582_v11 = vld [vmem:[%s6897_s28 + $0x40] ss:$16 sps:$4 sm:$0xff]   ;;  %v5583_v12 = vld [vmem:[%s6897_s28 + $0x48] ss:$16 sps:$4 sm:$0xff]  }
  0xc1   : > { %v5584_v13 = vld [vmem:[%s6897_s28 + $0x64] ss:$16 sps:$4 sm:$0xff]   ;;  %v5586_v14 = vld [vmem:[%s6897_s28 + $0x6c] ss:$16 sps:$4 sm:$0xff]   ;;  %v5588_v15 = vld [vmem:[%s6897_s28 + $0x60] ss:$16 sps:$4 sm:$0xff]  }
  0xc2   : > { %v5589_v16 = vld [vmem:[%s6897_s28 + $0x68] ss:$16 sps:$4 sm:$0xff]   ;;  %v5590_v17 = vld [vmem:[%s6897_s28 + $0x84] ss:$16 sps:$4 sm:$0xff]   ;;  %v5592_v18 = vld [vmem:[%s6897_s28 + $0x8c] ss:$16 sps:$4 sm:$0xff]  }
  0xc3   : > { %3562 = vmatpush1.bf16.msra.mxu0 %v5576_v7  ;;  %3906 = vmatpush1.bf16.msra.mxu1 %v5577_v8  ;;  %v5594_v19 = vld [vmem:[%s6897_s28 + $0x80] ss:$16 sps:$4 sm:$0xff]   ;;  %v5595_v20 = vld [vmem:[%s6897_s28 + $0x88] ss:$16 sps:$4 sm:$0xff]   ;;  %v5596_v21 = vld [vmem:[%s6897_s28 + $0xa4] ss:$16 sps:$4 sm:$0xff]  }
  0xc4   : > { %3563 = vmatprep.subr.bf16.mxu0 %v5578_v9  ;;  %3907 = vmatprep.subr.bf16.mxu1 %v5580_v10  ;;  %v5598_v22 = vld [vmem:[%s6897_s28 + $0xac] ss:$16 sps:$4 sm:$0xff]   ;;  %v5600_v23 = vld [vmem:[%s6897_s28 + $0xa0] ss:$16 sps:$4 sm:$0xff]   ;;  %v5601_v24 = vld [vmem:[%s6897_s28 + $0xa8] ss:$16 sps:$4 sm:$0xff]  }
  0xc5   : > { %v5602_v25 = vld [vmem:[%s6897_s28 + $0xc4] ss:$16 sps:$4 sm:$0xff]   ;;  %v5604_v26 = vld [vmem:[%s6897_s28 + $0xcc] ss:$16 sps:$4 sm:$0xff]   ;;  %v5606_v27 = vld [vmem:[%s6897_s28 + $0xc0] ss:$16 sps:$4 sm:$0xff]  }
  0xc6   : > { %v5607_v28 = vld [vmem:[%s6897_s28 + $0xc8] ss:$16 sps:$4 sm:$0xff]   ;;  %v5608_v29 = vld [vmem:[%s6897_s28 + $0xe4] ss:$16 sps:$4 sm:$0xff]   ;;  %v5610_v30 = vld [vmem:[%s6897_s28 + $0xec] ss:$16 sps:$4 sm:$0xff]  }
  0xc7   : > { %3564 = vmatpush1.bf16.msra.mxu0 %v5582_v11  ;;  %3908 = vmatpush1.bf16.msra.mxu1 %v5583_v12  ;;  %v5612_v31 = vld [vmem:[%s6897_s28 + $0xe0] ss:$16 sps:$4 sm:$0xff]   ;;  %v5613_v32 = vld [vmem:[%s6897_s28 + $0xe8] ss:$16 sps:$4 sm:$0xff]   ;;  %v5614_v33 = vld [vmem:[%s6897_s28 + $0x104] ss:$16 sps:$4 sm:$0xff]  }
  0xc8   : > { %3565 = vmatprep.subr.bf16.mxu0 %v5584_v13  ;;  %3909 = vmatprep.subr.bf16.mxu1 %v5586_v14  ;;  %v5616_v34 = vld [vmem:[%s6897_s28 + $0x10c] ss:$16 sps:$4 sm:$0xff]   ;;  %v5618_v35 = vld [vmem:[%s6897_s28 + $0x100] ss:$16 sps:$4 sm:$0xff]   ;;  %v5619_v36 = vld [vmem:[%s6897_s28 + $0x108] ss:$16 sps:$4 sm:$0xff]  }
  0xc9   : > { %v5620_v37 = vld [vmem:[%s6897_s28 + $0x124] ss:$16 sps:$4 sm:$0xff]   ;;  %v5622_v38 = vld [vmem:[%s6897_s28 + $0x12c] ss:$16 sps:$4 sm:$0xff]   ;;  %v5624_v39 = vld [vmem:[%s6897_s28 + $0x120] ss:$16 sps:$4 sm:$0xff]  }
  0xca   : > { %v5625_v40 = vld [vmem:[%s6897_s28 + $0x128] ss:$16 sps:$4 sm:$0xff]   ;;  %v5626_v41 = vld [vmem:[%s6897_s28 + $0x144] ss:$16 sps:$4 sm:$0xff]   ;;  %v5628_v42 = vld [vmem:[%s6897_s28 + $0x14c] ss:$16 sps:$4 sm:$0xff]  }
  0xcb   : > { %3566 = vmatpush1.bf16.msra.mxu0 %v5588_v15  ;;  %3910 = vmatpush1.bf16.msra.mxu1 %v5589_v16  ;;  %v5630_v43 = vld [vmem:[%s6897_s28 + $0x140] ss:$16 sps:$4 sm:$0xff]   ;;  %v5631_v44 = vld [vmem:[%s6897_s28 + $0x148] ss:$16 sps:$4 sm:$0xff]   ;;  %v5632_v45 = vld [vmem:[%s6897_s28 + $0x164] ss:$16 sps:$4 sm:$0xff]  }
  0xcc   : > { %3567 = vmatprep.subr.bf16.mxu0 %v5590_v17  ;;  %3911 = vmatprep.subr.bf16.mxu1 %v5592_v18  ;;  %v5634_v46 = vld [vmem:[%s6897_s28 + $0x16c] ss:$16 sps:$4 sm:$0xff]   ;;  %v369_v47 = vld [vmem:[#allocation3] sm:$0xff]  ;;  %v5637_v50 = vld [vmem:[%s6897_s28 + $0x168] ss:$16 sps:$4 sm:$0xff]   ;;  %p5357_p8 = scmp.ne.s32.totalorder %s6691_s25, 3 }
  0xcd   : > { %v377_v48 = vld [vmem:[#allocation3 + $0x40] sm:$0xff]  ;;  %v5640_v53 = vld [vmem:[%s6897_s28 + $0x18c] ss:$16 sps:$4 sm:$0xff]   ;;  %v5643_v55 = vld [vmem:[%s6897_s28 + $0x188] ss:$16 sps:$4 sm:$0xff]  }
  0xce   : > { %v5636_v49 = vld [vmem:[%s6897_s28 + $0x160] ss:$16 sps:$4 sm:$0xff]   ;;  %v4798_v51 = vcombine.high %v369_v47, %v377_v48  ;;  %v5638_v52 = vld [vmem:[%s6897_s28 + $0x184] ss:$16 sps:$4 sm:$0xff]   ;;  %v5646_v57 = vld [vmem:[%s6897_s28 + $0x1ac] ss:$16 sps:$4 sm:$0xff]   ;;  %v4797_v6 = vcombine.low %v369_v47, %v377_v48 }
  0xcf   : > { %3568 = vmatpush1.bf16.msra.mxu0 %v5594_v19  ;;  %3912 = vmatpush1.bf16.msra.mxu1 %v5595_v20  ;;  %v5642_v54 = vld [vmem:[%s6897_s28 + $0x180] ss:$16 sps:$4 sm:$0xff]   ;;  %v5644_v56 = vld [vmem:[%s6897_s28 + $0x1a4] ss:$16 sps:$4 sm:$0xff]   ;;  %v5649_v59 = vld [vmem:[%s6897_s28 + $0x1a8] ss:$16 sps:$4 sm:$0xff]  }
  0xd0   : > { %3569 = vmatprep.subr.bf16.mxu0 %v5596_v21  ;;  %3913 = vmatprep.subr.bf16.mxu1 %v5598_v22  ;;  %v5648_v58 = vld [vmem:[%s6897_s28 + $0x1a0] ss:$16 sps:$4 sm:$0xff]   ;;  %v5650_v60 = vld [vmem:[%s6897_s28 + $0x1c4] ss:$16 sps:$4 sm:$0xff]   ;;  %v5652_v61 = vld [vmem:[%s6897_s28 + $0x1cc] ss:$16 sps:$4 sm:$0xff]  }
  0xd1   : > { %3591 = vmatprep.mubr.bf16.mxu0 %v4798_v51  ;;  %3935 = vmatprep.mubr.bf16.mxu1 %v4798_v51  ;;  %v5654_v62 = vld [vmem:[%s6897_s28 + $0x1c0] ss:$16 sps:$4 sm:$0xff]   ;;  %v5655_v63 = vld [vmem:[%s6897_s28 + $0x1c8] ss:$16 sps:$4 sm:$0xff]   ;;  %v5656_v0 = vld [vmem:[%s6897_s28 + $0x1e4] ss:$16 sps:$4 sm:$0xff]  }
  0xd2   : > { %v5658_v1 = vld [vmem:[%s6897_s28 + $0x1ec] ss:$16 sps:$4 sm:$0xff]   ;;  %v5660_v2 = vld [vmem:[%s6897_s28 + $0x1e0] ss:$16 sps:$4 sm:$0xff]   ;;  %v5661_v3 = vld [vmem:[%s6897_s28 + $0x1e8] ss:$16 sps:$4 sm:$0xff]  }
  0xd3   : > { %3570 = vmatpush1.bf16.msra.mxu0 %v5600_v23  ;;  %3914 = vmatpush1.bf16.msra.mxu1 %v5601_v24  ;;  %v5664_v4 = vld [vmem:[%s6897_s28 + $0x204] ss:$16 sps:$4 sm:$0xff]   ;;  %v5667_v5 = vld [vmem:[%s6897_s28 + $0x20c] ss:$16 sps:$4 sm:$0xff]   ;;  %v5662_v7 = vld [vmem:[%s6897_s28 + $0x200] ss:$16 sps:$4 sm:$0xff]  }
  0xd4   : > { %3571 = vmatprep.subr.bf16.mxu0 %v5602_v25  ;;  %3915 = vmatprep.subr.bf16.mxu1 %v5604_v26  ;;  %v5665_v8 = vld [vmem:[%s6897_s28 + $0x208] ss:$16 sps:$4 sm:$0xff]   ;;  %v5670_v9 = vld [vmem:[%s6897_s28 + $0x224] ss:$16 sps:$4 sm:$0xff]   ;;  %v5673_v10 = vld [vmem:[%s6897_s28 + $0x22c] ss:$16 sps:$4 sm:$0xff]  }
  0xd5   : > { %v5668_v11 = vld [vmem:[%s6897_s28 + $0x220] ss:$16 sps:$4 sm:$0xff]   ;;  %v5671_v12 = vld [vmem:[%s6897_s28 + $0x228] ss:$16 sps:$4 sm:$0xff]   ;;  %v5676_v13 = vld [vmem:[%s6897_s28 + $0x244] ss:$16 sps:$4 sm:$0xff]  }
  0xd6   : > { %v5679_v14 = vld [vmem:[%s6897_s28 + $0x24c] ss:$16 sps:$4 sm:$0xff]   ;;  %v5674_v15 = vld [vmem:[%s6897_s28 + $0x240] ss:$16 sps:$4 sm:$0xff]   ;;  %v5677_v16 = vld [vmem:[%s6897_s28 + $0x248] ss:$16 sps:$4 sm:$0xff]  }
  0xd7   : > { %3572 = vmatpush1.bf16.msra.mxu0 %v5606_v27  ;;  %3916 = vmatpush1.bf16.msra.mxu1 %v5607_v28  ;;  %v5682_v17 = vld [vmem:[%s6897_s28 + $0x264] ss:$16 sps:$4 sm:$0xff]   ;;  %v5685_v18 = vld [vmem:[%s6897_s28 + $0x26c] ss:$16 sps:$4 sm:$0xff]   ;;  %v5680_v19 = vld [vmem:[%s6897_s28 + $0x260] ss:$16 sps:$4 sm:$0xff]  }
  0xd8   : > { %3573 = vmatprep.subr.bf16.mxu0 %v5608_v29  ;;  %3917 = vmatprep.subr.bf16.mxu1 %v5610_v30  ;;  %v5683_v20 = vld [vmem:[%s6897_s28 + $0x268] ss:$16 sps:$4 sm:$0xff]   ;;  %v5688_v21 = vld [vmem:[%s6897_s28 + $0x284] ss:$16 sps:$4 sm:$0xff]   ;;  %v5691_v22 = vld [vmem:[%s6897_s28 + $0x28c] ss:$16 sps:$4 sm:$0xff]  }
  0xd9   : > { %v5686_v23 = vld [vmem:[%s6897_s28 + $0x280] ss:$16 sps:$4 sm:$0xff]   ;;  %v5689_v24 = vld [vmem:[%s6897_s28 + $0x288] ss:$16 sps:$4 sm:$0xff]   ;;  %v5694_v25 = vld [vmem:[%s6897_s28 + $0x2a4] ss:$16 sps:$4 sm:$0xff]  }
  0xda   : > { %v5697_v26 = vld [vmem:[%s6897_s28 + $0x2ac] ss:$16 sps:$4 sm:$0xff]   ;;  %v5692_v27 = vld [vmem:[%s6897_s28 + $0x2a0] ss:$16 sps:$4 sm:$0xff]   ;;  %v5695_v28 = vld [vmem:[%s6897_s28 + $0x2a8] ss:$16 sps:$4 sm:$0xff]  }
  0xdb   : > { %3574 = vmatpush1.bf16.msra.mxu0 %v5612_v31  ;;  %3918 = vmatpush1.bf16.msra.mxu1 %v5613_v32  ;;  %v5700_v29 = vld [vmem:[%s6897_s28 + $0x2c4] ss:$16 sps:$4 sm:$0xff]   ;;  %v5703_v30 = vld [vmem:[%s6897_s28 + $0x2cc] ss:$16 sps:$4 sm:$0xff]   ;;  %v5719_v47 = vld [vmem:[%s6897_s28 + $0x328] ss:$16 sps:$4 sm:$0xff]  }
  0xdc   : > { %3575 = vmatprep.subr.bf16.mxu0 %v5614_v33  ;;  %3919 = vmatprep.subr.bf16.mxu1 %v5616_v34  ;;  %v7007_v31 = vld [vmem:[#allocation3 + $0x8] sm:$0xff]  ;;  %v5698_v33 = vld [vmem:[%s6897_s28 + $0x2c0] ss:$16 sps:$4 sm:$0xff]   ;;  %v5724_v48 = vld [vmem:[%s6897_s28 + $0x344] ss:$16 sps:$4 sm:$0xff]  }
  0xdd   : > { %v7009_v32 = vld [vmem:[#allocation3 + $0x48] sm:$0xff] }
  0xde   : > { %v5701_v34 = vld [vmem:[%s6897_s28 + $0x2c8] ss:$16 sps:$4 sm:$0xff]  }
  0xdf   : > { %3576 = vmatpush1.bf16.msra.mxu0 %v5618_v35  ;;  %3920 = vmatpush1.bf16.msra.mxu1 %v5619_v36  ;;  %v4800_v35 = vcombine.high %v7007_v31, %v7009_v32  ;;  %v5706_v36 = vld [vmem:[%s6897_s28 + $0x2e4] ss:$16 sps:$4 sm:$0xff]   ;;  %v5725_v51 = vld [vmem:[%s6897_s28 + $0x348] ss:$16 sps:$4 sm:$0xff]  }
  0xe0   : > { %3577 = vmatprep.subr.bf16.mxu0 %v5620_v37  ;;  %3921 = vmatprep.subr.bf16.mxu1 %v5622_v38  ;;  %v5709_v37 = vld [vmem:[%s6897_s28 + $0x2ec] ss:$16 sps:$4 sm:$0xff]   ;;  %v5704_v38 = vld [vmem:[%s6897_s28 + $0x2e0] ss:$16 sps:$4 sm:$0xff]  }
  0xe3   : > { %3578 = vmatpush1.bf16.msra.mxu0 %v5624_v39  ;;  %3922 = vmatpush1.bf16.msra.mxu1 %v5625_v40  ;;  %v5707_v39 = vld [vmem:[%s6897_s28 + $0x2e8] ss:$16 sps:$4 sm:$0xff]   ;;  %v5712_v40 = vld [vmem:[%s6897_s28 + $0x304] ss:$16 sps:$4 sm:$0xff]  }
  0xe4   : > { %3579 = vmatprep.subr.bf16.mxu0 %v5626_v41  ;;  %3923 = vmatprep.subr.bf16.mxu1 %v5628_v42  ;;  %v5715_v41 = vld [vmem:[%s6897_s28 + $0x30c] ss:$16 sps:$4 sm:$0xff]   ;;  %v5710_v42 = vld [vmem:[%s6897_s28 + $0x300] ss:$16 sps:$4 sm:$0xff]  }
  0xe7   : > { %3580 = vmatpush1.bf16.msra.mxu0 %v5630_v43  ;;  %3924 = vmatpush1.bf16.msra.mxu1 %v5631_v44  ;;  %v5713_v43 = vld [vmem:[%s6897_s28 + $0x308] ss:$16 sps:$4 sm:$0xff]   ;;  %v5718_v44 = vld [vmem:[%s6897_s28 + $0x324] ss:$16 sps:$4 sm:$0xff]  }
  0xe8   : > { %3581 = vmatprep.subr.bf16.mxu0 %v5632_v45  ;;  %3925 = vmatprep.subr.bf16.mxu1 %v5634_v46  ;;  %v5721_v45 = vld [vmem:[%s6897_s28 + $0x32c] ss:$16 sps:$4 sm:$0xff]   ;;  %v5716_v46 = vld [vmem:[%s6897_s28 + $0x320] ss:$16 sps:$4 sm:$0xff]  }
  0xeb   : > { %3582 = vmatpush1.bf16.msra.mxu0 %v5636_v49  ;;  %3926 = vmatpush1.bf16.msra.mxu1 %v5637_v50  ;;  %v5727_v49 = vld [vmem:[%s6897_s28 + $0x34c] ss:$16 sps:$4 sm:$0xff]   ;;  %v5722_v50 = vld [vmem:[%s6897_s28 + $0x340] ss:$16 sps:$4 sm:$0xff]  }
  0xec   : > { %3583 = vmatprep.subr.bf16.mxu0 %v5638_v52  ;;  %3927 = vmatprep.subr.bf16.mxu1 %v5640_v53  ;;  %v5730_v52 = vld [vmem:[%s6897_s28 + $0x364] ss:$16 sps:$4 sm:$0xff]   ;;  %v5733_v53 = vld [vmem:[%s6897_s28 + $0x36c] ss:$16 sps:$4 sm:$0xff]  }
  0xef   : > { %3584 = vmatpush1.bf16.msra.mxu0 %v5642_v54  ;;  %3928 = vmatpush1.bf16.msra.mxu1 %v5643_v55  ;;  %v5728_v54 = vld [vmem:[%s6897_s28 + $0x360] ss:$16 sps:$4 sm:$0xff]   ;;  %v5731_v55 = vld [vmem:[%s6897_s28 + $0x368] ss:$16 sps:$4 sm:$0xff]  }
  0xf0   : > { %3585 = vmatprep.subr.bf16.mxu0 %v5644_v56  ;;  %3929 = vmatprep.subr.bf16.mxu1 %v5646_v57  ;;  %v5736_v56 = vld [vmem:[%s6897_s28 + $0x384] ss:$16 sps:$4 sm:$0xff]   ;;  %v5739_v57 = vld [vmem:[%s6897_s28 + $0x38c] ss:$16 sps:$4 sm:$0xff]  }
  0xf3   : > { %3586 = vmatpush1.bf16.msra.mxu0 %v5648_v58  ;;  %3930 = vmatpush1.bf16.msra.mxu1 %v5649_v59  ;;  %v5734_v58 = vld [vmem:[%s6897_s28 + $0x380] ss:$16 sps:$4 sm:$0xff]   ;;  %v5737_v59 = vld [vmem:[%s6897_s28 + $0x388] ss:$16 sps:$4 sm:$0xff]  }
  0xf4   : > { %3587 = vmatprep.subr.bf16.mxu0 %v5650_v60  ;;  %3931 = vmatprep.subr.bf16.mxu1 %v5652_v61  ;;  %v5742_v60 = vld [vmem:[%s6897_s28 + $0x3a4] ss:$16 sps:$4 sm:$0xff]   ;;  %v5745_v61 = vld [vmem:[%s6897_s28 + $0x3ac] ss:$16 sps:$4 sm:$0xff]  }
  0xf7   : > { %3588 = vmatpush1.bf16.msra.mxu0 %v5654_v62  ;;  %3932 = vmatpush1.bf16.msra.mxu1 %v5655_v63  ;;  %v5740_v62 = vld [vmem:[%s6897_s28 + $0x3a0] ss:$16 sps:$4 sm:$0xff]   ;;  %v5743_v63 = vld [vmem:[%s6897_s28 + $0x3a8] ss:$16 sps:$4 sm:$0xff]  }
  0xf8   : > { %3589 = vmatprep.subr.bf16.mxu0 %v5656_v0  ;;  %3933 = vmatprep.subr.bf16.mxu1 %v5658_v1  ;;  %v5748_v0 = vld [vmem:[%s6897_s28 + $0x3c4] ss:$16 sps:$4 sm:$0xff]   ;;  %v5751_v1 = vld [vmem:[%s6897_s28 + $0x3cc] ss:$16 sps:$4 sm:$0xff]  }
  0xfb   : > { %3590 = vmatpush1.bf16.msra.mxu0 %v5660_v2  ;;  %3934 = vmatpush1.bf16.msra.mxu1 %v5661_v3  ;;  %v5746_v2 = vld [vmem:[%s6897_s28 + $0x3c0] ss:$16 sps:$4 sm:$0xff]   ;;  %v5749_v3 = vld [vmem:[%s6897_s28 + $0x3c8] ss:$16 sps:$4 sm:$0xff]  }
  0xfc   : > { %3602 = vmatprep.subr.bf16.mxu0 %v5664_v4  ;;  %3946 = vmatprep.subr.bf16.mxu1 %v5667_v5  ;;  %v5754_v4 = vld [vmem:[%s6897_s28 + $0x3e4] ss:$16 sps:$4 sm:$0xff]   ;;  %v5757_v5 = vld [vmem:[%s6897_s28 + $0x3ec] ss:$16 sps:$4 sm:$0xff]  }
  0xfe   : > { %3592 = vmatmul.mubr.bf16.vlgmr.msra.gmra.mrb[0].mxu0 %v4797_v6  ;;  %3936 = vmatmul.mubr.bf16.vlgmr.msra.gmra.mrb[0].mxu1 %v4797_v6  ;;  %v5752_v6 = vld [vmem:[%s6897_s28 + $0x3e0] ss:$16 sps:$4 sm:$0xff]  }
  0xff   : > { %3603 = vmatpush1.bf16.msra.mxu0 %v5662_v7  ;;  %3947 = vmatpush1.bf16.msra.mxu1 %v5665_v8  ;;  %v5755_v7 = vld [vmem:[%s6897_s28 + $0x3e8] ss:$16 sps:$4 sm:$0xff]   ;;  %v5760_v8 = vld [vmem:[%s6897_s28 + $0x404] ss:$16 sps:$4 sm:$0xff]  }
 0x100   : > { %3604 = vmatprep.subr.bf16.mxu0 %v5670_v9  ;;  %3948 = vmatprep.subr.bf16.mxu1 %v5673_v10  ;;  %v5763_v9 = vld [vmem:[%s6897_s28 + $0x40c] ss:$16 sps:$4 sm:$0xff]   ;;  %v4799_v10 = vcombine.low %v7007_v31, %v7009_v32  ;;  %v5785_v31 = vld [vmem:[%s6897_s28 + $0x488] ss:$16 sps:$4 sm:$0xff]   ;;  %v5790_v32 = vld [vmem:[%s6897_s28 + $0x4a4] ss:$16 sps:$4 sm:$0xff]  }
 0x101   : > { %3634 = vmatprep.mubr.bf16.mxu0 %v4800_v35  ;;  %3978 = vmatprep.mubr.bf16.mxu1 %v4800_v35  ;;  %v5791_v35 = vld [vmem:[%s6897_s28 + $0x4a8] ss:$16 sps:$4 sm:$0xff]  }
 0x103   : > { %3605 = vmatpush1.bf16.msra.mxu0 %v5668_v11  ;;  %3949 = vmatpush1.bf16.msra.mxu1 %v5671_v12  ;;  %v5758_v11 = vld [vmem:[%s6897_s28 + $0x400] ss:$16 sps:$4 sm:$0xff]   ;;  %v5761_v12 = vld [vmem:[%s6897_s28 + $0x408] ss:$16 sps:$4 sm:$0xff]  }
 0x104   : > { %3606 = vmatprep.subr.bf16.mxu0 %v5676_v13  ;;  %3950 = vmatprep.subr.bf16.mxu1 %v5679_v14  ;;  %v5766_v13 = vld [vmem:[%s6897_s28 + $0x424] ss:$16 sps:$4 sm:$0xff]   ;;  %v5769_v14 = vld [vmem:[%s6897_s28 + $0x42c] ss:$16 sps:$4 sm:$0xff]  }
 0x107   : > { %3607 = vmatpush1.bf16.msra.mxu0 %v5674_v15  ;;  %3951 = vmatpush1.bf16.msra.mxu1 %v5677_v16  ;;  %v7059_v15 = vld [vmem:[#allocation3 + $0x10] sm:$0xff] }
 0x108   : > { %3608 = vmatprep.subr.bf16.mxu0 %v5682_v17  ;;  %3952 = vmatprep.subr.bf16.mxu1 %v5685_v18  ;;  %v7061_v16 = vld [vmem:[#allocation3 + $0x50] sm:$0xff] }
 0x109   : > { %v4802_v17 = vcombine.high %v7059_v15, %v7061_v16  ;;  %v5764_v18 = vld [vmem:[%s6897_s28 + $0x420] ss:$16 sps:$4 sm:$0xff]  }
 0x10b   : > { %3609 = vmatpush1.bf16.msra.mxu0 %v5680_v19  ;;  %3953 = vmatpush1.bf16.msra.mxu1 %v5683_v20  ;;  %v5767_v19 = vld [vmem:[%s6897_s28 + $0x428] ss:$16 sps:$4 sm:$0xff]   ;;  %v5772_v20 = vld [vmem:[%s6897_s28 + $0x444] ss:$16 sps:$4 sm:$0xff]  }
 0x10c   : > { %3610 = vmatprep.subr.bf16.mxu0 %v5688_v21  ;;  %3954 = vmatprep.subr.bf16.mxu1 %v5691_v22  ;;  %v5775_v21 = vld [vmem:[%s6897_s28 + $0x44c] ss:$16 sps:$4 sm:$0xff]   ;;  %v5770_v22 = vld [vmem:[%s6897_s28 + $0x440] ss:$16 sps:$4 sm:$0xff]  }
 0x10f   : > { %3611 = vmatpush1.bf16.msra.mxu0 %v5686_v23  ;;  %3955 = vmatpush1.bf16.msra.mxu1 %v5689_v24  ;;  %v5773_v23 = vld [vmem:[%s6897_s28 + $0x448] ss:$16 sps:$4 sm:$0xff]   ;;  %v5778_v24 = vld [vmem:[%s6897_s28 + $0x464] ss:$16 sps:$4 sm:$0xff]  }
 0x110   : > { %3612 = vmatprep.subr.bf16.mxu0 %v5694_v25  ;;  %3956 = vmatprep.subr.bf16.mxu1 %v5697_v26  ;;  %v5781_v25 = vld [vmem:[%s6897_s28 + $0x46c] ss:$16 sps:$4 sm:$0xff]   ;;  %v5776_v26 = vld [vmem:[%s6897_s28 + $0x460] ss:$16 sps:$4 sm:$0xff]  }
 0x113   : > { %3613 = vmatpush1.bf16.msra.mxu0 %v5692_v27  ;;  %3957 = vmatpush1.bf16.msra.mxu1 %v5695_v28  ;;  %v5779_v27 = vld [vmem:[%s6897_s28 + $0x468] ss:$16 sps:$4 sm:$0xff]   ;;  %v5784_v28 = vld [vmem:[%s6897_s28 + $0x484] ss:$16 sps:$4 sm:$0xff]  }
 0x114   : > { %3614 = vmatprep.subr.bf16.mxu0 %v5700_v29  ;;  %3958 = vmatprep.subr.bf16.mxu1 %v5703_v30  ;;  %v5787_v29 = vld [vmem:[%s6897_s28 + $0x48c] ss:$16 sps:$4 sm:$0xff]   ;;  %v5782_v30 = vld [vmem:[%s6897_s28 + $0x480] ss:$16 sps:$4 sm:$0xff]  }
 0x117   : > { %3615 = vmatpush1.bf16.msra.mxu0 %v5698_v33  ;;  %3959 = vmatpush1.bf16.msra.mxu1 %v5701_v34  ;;  %v5793_v33 = vld [vmem:[%s6897_s28 + $0x4ac] ss:$16 sps:$4 sm:$0xff]   ;;  %v5788_v34 = vld [vmem:[%s6897_s28 + $0x4a0] ss:$16 sps:$4 sm:$0xff]  }
 0x118   : > { %3616 = vmatprep.subr.bf16.mxu0 %v5706_v36  ;;  %3960 = vmatprep.subr.bf16.mxu1 %v5709_v37  ;;  %v5796_v36 = vld [vmem:[%s6897_s28 + $0x4c4] ss:$16 sps:$4 sm:$0xff]   ;;  %v5799_v37 = vld [vmem:[%s6897_s28 + $0x4cc] ss:$16 sps:$4 sm:$0xff]  }
 0x11b   : > { %3617 = vmatpush1.bf16.msra.mxu0 %v5704_v38  ;;  %3961 = vmatpush1.bf16.msra.mxu1 %v5707_v39  ;;  %v5794_v38 = vld [vmem:[%s6897_s28 + $0x4c0] ss:$16 sps:$4 sm:$0xff]   ;;  %v5797_v39 = vld [vmem:[%s6897_s28 + $0x4c8] ss:$16 sps:$4 sm:$0xff]  }
 0x11c   : > { %3618 = vmatprep.subr.bf16.mxu0 %v5712_v40  ;;  %3962 = vmatprep.subr.bf16.mxu1 %v5715_v41  ;;  %v5802_v40 = vld [vmem:[%s6897_s28 + $0x4e4] ss:$16 sps:$4 sm:$0xff]   ;;  %v5805_v41 = vld [vmem:[%s6897_s28 + $0x4ec] ss:$16 sps:$4 sm:$0xff]  }
 0x11f   : > { %3619 = vmatpush1.bf16.msra.mxu0 %v5710_v42  ;;  %3963 = vmatpush1.bf16.msra.mxu1 %v5713_v43  ;;  %v5800_v42 = vld [vmem:[%s6897_s28 + $0x4e0] ss:$16 sps:$4 sm:$0xff]   ;;  %v5803_v43 = vld [vmem:[%s6897_s28 + $0x4e8] ss:$16 sps:$4 sm:$0xff]  }
 0x120   : > { %3620 = vmatprep.subr.bf16.mxu0 %v5718_v44  ;;  %3964 = vmatprep.subr.bf16.mxu1 %v5721_v45  ;;  %v5808_v44 = vld [vmem:[%s6897_s28 + $0x504] ss:$16 sps:$4 sm:$0xff]   ;;  %v5811_v45 = vld [vmem:[%s6897_s28 + $0x50c] ss:$16 sps:$4 sm:$0xff]  }
 0x123   : > { %3621 = vmatpush1.bf16.msra.mxu0 %v5716_v46  ;;  %3965 = vmatpush1.bf16.msra.mxu1 %v5719_v47  ;;  %v5806_v46 = vld [vmem:[%s6897_s28 + $0x500] ss:$16 sps:$4 sm:$0xff]   ;;  %v5809_v47 = vld [vmem:[%s6897_s28 + $0x508] ss:$16 sps:$4 sm:$0xff]  }
 0x124   : > { %3622 = vmatprep.subr.bf16.mxu0 %v5724_v48  ;;  %3966 = vmatprep.subr.bf16.mxu1 %v5727_v49  ;;  %v5814_v48 = vld [vmem:[%s6897_s28 + $0x524] ss:$16 sps:$4 sm:$0xff]   ;;  %v5817_v49 = vld [vmem:[%s6897_s28 + $0x52c] ss:$16 sps:$4 sm:$0xff]  }
 0x127   : > { %3623 = vmatpush1.bf16.msra.mxu0 %v5722_v50  ;;  %3967 = vmatpush1.bf16.msra.mxu1 %v5725_v51  ;;  %v5812_v50 = vld [vmem:[%s6897_s28 + $0x520] ss:$16 sps:$4 sm:$0xff]   ;;  %v5815_v51 = vld [vmem:[%s6897_s28 + $0x528] ss:$16 sps:$4 sm:$0xff]  }
 0x128   : > { %3624 = vmatprep.subr.bf16.mxu0 %v5730_v52  ;;  %3968 = vmatprep.subr.bf16.mxu1 %v5733_v53  ;;  %v5820_v52 = vld [vmem:[%s6897_s28 + $0x544] ss:$16 sps:$4 sm:$0xff]   ;;  %v5823_v53 = vld [vmem:[%s6897_s28 + $0x54c] ss:$16 sps:$4 sm:$0xff]  }
 0x12b   : > { %3625 = vmatpush1.bf16.msra.mxu0 %v5728_v54  ;;  %3969 = vmatpush1.bf16.msra.mxu1 %v5731_v55  ;;  %v5818_v54 = vld [vmem:[%s6897_s28 + $0x540] ss:$16 sps:$4 sm:$0xff]   ;;  %v5821_v55 = vld [vmem:[%s6897_s28 + $0x548] ss:$16 sps:$4 sm:$0xff]  }
 0x12c   : > { %3626 = vmatprep.subr.bf16.mxu0 %v5736_v56  ;;  %3970 = vmatprep.subr.bf16.mxu1 %v5739_v57  ;;  %v5826_v56 = vld [vmem:[%s6897_s28 + $0x564] ss:$16 sps:$4 sm:$0xff]   ;;  %v5829_v57 = vld [vmem:[%s6897_s28 + $0x56c] ss:$16 sps:$4 sm:$0xff]  }
 0x12f   : > { %3627 = vmatpush1.bf16.msra.mxu0 %v5734_v58  ;;  %3971 = vmatpush1.bf16.msra.mxu1 %v5737_v59  ;;  %v5824_v58 = vld [vmem:[%s6897_s28 + $0x560] ss:$16 sps:$4 sm:$0xff]   ;;  %v5827_v59 = vld [vmem:[%s6897_s28 + $0x568] ss:$16 sps:$4 sm:$0xff]  }
 0x130   : > { %3628 = vmatprep.subr.bf16.mxu0 %v5742_v60  ;;  %3972 = vmatprep.subr.bf16.mxu1 %v5745_v61  ;;  %v5832_v60 = vld [vmem:[%s6897_s28 + $0x584] ss:$16 sps:$4 sm:$0xff]   ;;  %v5835_v61 = vld [vmem:[%s6897_s28 + $0x58c] ss:$16 sps:$4 sm:$0xff]  }
 0x133   : > { %3629 = vmatpush1.bf16.msra.mxu0 %v5740_v62  ;;  %3973 = vmatpush1.bf16.msra.mxu1 %v5743_v63  ;;  %v5830_v62 = vld [vmem:[%s6897_s28 + $0x580] ss:$16 sps:$4 sm:$0xff]   ;;  %v5833_v63 = vld [vmem:[%s6897_s28 + $0x588] ss:$16 sps:$4 sm:$0xff]  }
 0x134   : > { %3630 = vmatprep.subr.bf16.mxu0 %v5748_v0  ;;  %3974 = vmatprep.subr.bf16.mxu1 %v5751_v1  ;;  %v5838_v0 = vld [vmem:[%s6897_s28 + $0x5a4] ss:$16 sps:$4 sm:$0xff]   ;;  %v5841_v1 = vld [vmem:[%s6897_s28 + $0x5ac] ss:$16 sps:$4 sm:$0xff]  }
 0x137   : > { %3631 = vmatpush1.bf16.msra.mxu0 %v5746_v2  ;;  %3975 = vmatpush1.bf16.msra.mxu1 %v5749_v3  ;;  %v5836_v2 = vld [vmem:[%s6897_s28 + $0x5a0] ss:$16 sps:$4 sm:$0xff]   ;;  %v5839_v3 = vld [vmem:[%s6897_s28 + $0x5a8] ss:$16 sps:$4 sm:$0xff]  }
 0x138   : > { %3632 = vmatprep.subr.bf16.mxu0 %v5754_v4  ;;  %3976 = vmatprep.subr.bf16.mxu1 %v5757_v5  ;;  %v5844_v4 = vld [vmem:[%s6897_s28 + $0x5c4] ss:$16 sps:$4 sm:$0xff]   ;;  %v5847_v5 = vld [vmem:[%s6897_s28 + $0x5cc] ss:$16 sps:$4 sm:$0xff]  }
 0x13b   : > { %3633 = vmatpush1.bf16.msra.mxu0 %v5752_v6  ;;  %3977 = vmatpush1.bf16.msra.mxu1 %v5755_v7  ;;  %v5842_v6 = vld [vmem:[%s6897_s28 + $0x5c0] ss:$16 sps:$4 sm:$0xff]   ;;  %v5845_v7 = vld [vmem:[%s6897_s28 + $0x5c8] ss:$16 sps:$4 sm:$0xff]  }
 0x13c   : > { %3645 = vmatprep.subr.bf16.mxu0 %v5760_v8  ;;  %3989 = vmatprep.subr.bf16.mxu1 %v5763_v9  ;;  %v5850_v8 = vld [vmem:[%s6897_s28 + $0x5e4] ss:$16 sps:$4 sm:$0xff]   ;;  %v5853_v9 = vld [vmem:[%s6897_s28 + $0x5ec] ss:$16 sps:$4 sm:$0xff]  }
 0x13e   : > { %3635 = vmatmul.mubr.bf16.vlgmr.msra.gmra.mrb[0].mxu0 %v4799_v10  ;;  %3979 = vmatmul.mubr.bf16.vlgmr.msra.gmra.mrb[0].mxu1 %v4799_v10  ;;  %v5848_v10 = vld [vmem:[%s6897_s28 + $0x5e0] ss:$16 sps:$4 sm:$0xff]  }
 0x13f   : > { %3646 = vmatpush1.bf16.msra.mxu0 %v5758_v11  ;;  %3990 = vmatpush1.bf16.msra.mxu1 %v5761_v12  ;;  %v5851_v11 = vld [vmem:[%s6897_s28 + $0x5e8] ss:$16 sps:$4 sm:$0xff]   ;;  %v5856_v12 = vld [vmem:[%s6897_s28 + $0x604] ss:$16 sps:$4 sm:$0xff]  }
 0x140   : > { %3647 = vmatprep.subr.bf16.mxu0 %v5766_v13  ;;  %3991 = vmatprep.subr.bf16.mxu1 %v5769_v14  ;;  %v5859_v13 = vld [vmem:[%s6897_s28 + $0x60c] ss:$16 sps:$4 sm:$0xff]   ;;  %v5854_v14 = vld [vmem:[%s6897_s28 + $0x600] ss:$16 sps:$4 sm:$0xff]  }
 0x141   : > { %3677 = vmatprep.mubr.bf16.mxu0 %v4802_v17  ;;  %4021 = vmatprep.mubr.bf16.mxu1 %v4802_v17  ;;  %v5857_v17 = vld [vmem:[%s6897_s28 + $0x608] ss:$16 sps:$4 sm:$0xff]  }
 0x143   : > { %3648 = vmatpush1.bf16.msra.mxu0 %v5764_v18  ;;  %3992 = vmatpush1.bf16.msra.mxu1 %v5767_v19  ;;  %v4801_v18 = vcombine.low %v7059_v15, %v7061_v16  ;;  %v7129_v19 = vld [vmem:[#allocation3 + $0x18] sm:$0xff]  ;;  %v5860_v15 = vld [vmem:[%s6897_s28 + $0x620] ss:$16 sps:$4 sm:$0xff]  }
 0x144   : > { %3649 = vmatprep.subr.bf16.mxu0 %v5772_v20  ;;  %3993 = vmatprep.subr.bf16.mxu1 %v5775_v21  ;;  %v7131_v20 = vld [vmem:[#allocation3 + $0x58] sm:$0xff]  ;;  %v5862_v21 = vld [vmem:[%s6897_s28 + $0x624] ss:$16 sps:$4 sm:$0xff]  }
 0x145   : > { %v5863_v16 = vld [vmem:[%s6897_s28 + $0x628] ss:$16 sps:$4 sm:$0xff]  }
 0x147   : > { %3650 = vmatpush1.bf16.msra.mxu0 %v5770_v22  ;;  %3994 = vmatpush1.bf16.msra.mxu1 %v5773_v23  ;;  %v5865_v22 = vld [vmem:[%s6897_s28 + $0x62c] ss:$16 sps:$4 sm:$0xff]   ;;  %v4804_v23 = vcombine.high %v7129_v19, %v7131_v20 }
 0x148   : > { %3651 = vmatprep.subr.bf16.mxu0 %v5778_v24  ;;  %3995 = vmatprep.subr.bf16.mxu1 %v5781_v25  ;;  %v5868_v24 = vld [vmem:[%s6897_s28 + $0x644] ss:$16 sps:$4 sm:$0xff]   ;;  %v5871_v25 = vld [vmem:[%s6897_s28 + $0x64c] ss:$16 sps:$4 sm:$0xff]  }
 0x14b   : > { %3652 = vmatpush1.bf16.msra.mxu0 %v5776_v26  ;;  %3996 = vmatpush1.bf16.msra.mxu1 %v5779_v27  ;;  %v5866_v26 = vld [vmem:[%s6897_s28 + $0x640] ss:$16 sps:$4 sm:$0xff]   ;;  %v5869_v27 = vld [vmem:[%s6897_s28 + $0x648] ss:$16 sps:$4 sm:$0xff]  }
 0x14c   : > { %3653 = vmatprep.subr.bf16.mxu0 %v5784_v28  ;;  %3997 = vmatprep.subr.bf16.mxu1 %v5787_v29  ;;  %v5874_v28 = vld [vmem:[%s6897_s28 + $0x664] ss:$16 sps:$4 sm:$0xff]   ;;  %v5877_v29 = vld [vmem:[%s6897_s28 + $0x66c] ss:$16 sps:$4 sm:$0xff]  }
 0x14f   : > { %3654 = vmatpush1.bf16.msra.mxu0 %v5782_v30  ;;  %3998 = vmatpush1.bf16.msra.mxu1 %v5785_v31  ;;  %v5872_v30 = vld [vmem:[%s6897_s28 + $0x660] ss:$16 sps:$4 sm:$0xff]   ;;  %v5875_v31 = vld [vmem:[%s6897_s28 + $0x668] ss:$16 sps:$4 sm:$0xff]  }
 0x150   : > { %3655 = vmatprep.subr.bf16.mxu0 %v5790_v32  ;;  %3999 = vmatprep.subr.bf16.mxu1 %v5793_v33  ;;  %v5880_v32 = vld [vmem:[%s6897_s28 + $0x684] ss:$16 sps:$4 sm:$0xff]   ;;  %v5883_v33 = vld [vmem:[%s6897_s28 + $0x68c] ss:$16 sps:$4 sm:$0xff]  }
 0x153   : > { %3656 = vmatpush1.bf16.msra.mxu0 %v5788_v34  ;;  %4000 = vmatpush1.bf16.msra.mxu1 %v5791_v35  ;;  %v5878_v34 = vld [vmem:[%s6897_s28 + $0x680] ss:$16 sps:$4 sm:$0xff]   ;;  %v5881_v35 = vld [vmem:[%s6897_s28 + $0x688] ss:$16 sps:$4 sm:$0xff]  }
 0x154   : > { %3657 = vmatprep.subr.bf16.mxu0 %v5796_v36  ;;  %4001 = vmatprep.subr.bf16.mxu1 %v5799_v37  ;;  %v5886_v36 = vld [vmem:[%s6897_s28 + $0x6a4] ss:$16 sps:$4 sm:$0xff]   ;;  %v5889_v37 = vld [vmem:[%s6897_s28 + $0x6ac] ss:$16 sps:$4 sm:$0xff]  }
 0x157   : > { %3658 = vmatpush1.bf16.msra.mxu0 %v5794_v38  ;;  %4002 = vmatpush1.bf16.msra.mxu1 %v5797_v39  ;;  %v5884_v38 = vld [vmem:[%s6897_s28 + $0x6a0] ss:$16 sps:$4 sm:$0xff]   ;;  %v5887_v39 = vld [vmem:[%s6897_s28 + $0x6a8] ss:$16 sps:$4 sm:$0xff]  }
 0x158   : > { %3659 = vmatprep.subr.bf16.mxu0 %v5802_v40  ;;  %4003 = vmatprep.subr.bf16.mxu1 %v5805_v41  ;;  %v5892_v40 = vld [vmem:[%s6897_s28 + $0x6c4] ss:$16 sps:$4 sm:$0xff]   ;;  %v5895_v41 = vld [vmem:[%s6897_s28 + $0x6cc] ss:$16 sps:$4 sm:$0xff]  }
 0x15b   : > { %3660 = vmatpush1.bf16.msra.mxu0 %v5800_v42  ;;  %4004 = vmatpush1.bf16.msra.mxu1 %v5803_v43  ;;  %v5890_v42 = vld [vmem:[%s6897_s28 + $0x6c0] ss:$16 sps:$4 sm:$0xff]   ;;  %v5893_v43 = vld [vmem:[%s6897_s28 + $0x6c8] ss:$16 sps:$4 sm:$0xff]  }
 0x15c   : > { %3661 = vmatprep.subr.bf16.mxu0 %v5808_v44  ;;  %4005 = vmatprep.subr.bf16.mxu1 %v5811_v45  ;;  %v5898_v44 = vld [vmem:[%s6897_s28 + $0x6e4] ss:$16 sps:$4 sm:$0xff]   ;;  %v5901_v45 = vld [vmem:[%s6897_s28 + $0x6ec] ss:$16 sps:$4 sm:$0xff]  }
 0x15f   : > { %3662 = vmatpush1.bf16.msra.mxu0 %v5806_v46  ;;  %4006 = vmatpush1.bf16.msra.mxu1 %v5809_v47  ;;  %v5896_v46 = vld [vmem:[%s6897_s28 + $0x6e0] ss:$16 sps:$4 sm:$0xff]   ;;  %v5899_v47 = vld [vmem:[%s6897_s28 + $0x6e8] ss:$16 sps:$4 sm:$0xff]  }
 0x160   : > { %3663 = vmatprep.subr.bf16.mxu0 %v5814_v48  ;;  %4007 = vmatprep.subr.bf16.mxu1 %v5817_v49  ;;  %v5904_v48 = vld [vmem:[%s6897_s28 + $0x704] ss:$16 sps:$4 sm:$0xff]   ;;  %v5907_v49 = vld [vmem:[%s6897_s28 + $0x70c] ss:$16 sps:$4 sm:$0xff]  }
 0x163   : > { %3664 = vmatpush1.bf16.msra.mxu0 %v5812_v50  ;;  %4008 = vmatpush1.bf16.msra.mxu1 %v5815_v51  ;;  %v5902_v50 = vld [vmem:[%s6897_s28 + $0x700] ss:$16 sps:$4 sm:$0xff]   ;;  %v5905_v51 = vld [vmem:[%s6897_s28 + $0x708] ss:$16 sps:$4 sm:$0xff]  }
 0x164   : > { %3665 = vmatprep.subr.bf16.mxu0 %v5820_v52  ;;  %4009 = vmatprep.subr.bf16.mxu1 %v5823_v53  ;;  %v5910_v52 = vld [vmem:[%s6897_s28 + $0x724] ss:$16 sps:$4 sm:$0xff]   ;;  %v5913_v53 = vld [vmem:[%s6897_s28 + $0x72c] ss:$16 sps:$4 sm:$0xff]  }
 0x167   : > { %3666 = vmatpush1.bf16.msra.mxu0 %v5818_v54  ;;  %4010 = vmatpush1.bf16.msra.mxu1 %v5821_v55  ;;  %v5908_v54 = vld [vmem:[%s6897_s28 + $0x720] ss:$16 sps:$4 sm:$0xff]   ;;  %v5911_v55 = vld [vmem:[%s6897_s28 + $0x728] ss:$16 sps:$4 sm:$0xff]  }
 0x168   : > { %3667 = vmatprep.subr.bf16.mxu0 %v5826_v56  ;;  %4011 = vmatprep.subr.bf16.mxu1 %v5829_v57  ;;  %v5916_v56 = vld [vmem:[%s6897_s28 + $0x744] ss:$16 sps:$4 sm:$0xff]   ;;  %v5919_v57 = vld [vmem:[%s6897_s28 + $0x74c] ss:$16 sps:$4 sm:$0xff]  }
 0x16b   : > { %3668 = vmatpush1.bf16.msra.mxu0 %v5824_v58  ;;  %4012 = vmatpush1.bf16.msra.mxu1 %v5827_v59  ;;  %v5914_v58 = vld [vmem:[%s6897_s28 + $0x740] ss:$16 sps:$4 sm:$0xff]   ;;  %v5917_v59 = vld [vmem:[%s6897_s28 + $0x748] ss:$16 sps:$4 sm:$0xff]  }
 0x16c   : > { %3669 = vmatprep.subr.bf16.mxu0 %v5832_v60  ;;  %4013 = vmatprep.subr.bf16.mxu1 %v5835_v61  ;;  %v5922_v60 = vld [vmem:[%s6897_s28 + $0x764] ss:$16 sps:$4 sm:$0xff]   ;;  %v5925_v61 = vld [vmem:[%s6897_s28 + $0x76c] ss:$16 sps:$4 sm:$0xff]  }
 0x16f   : > { %3670 = vmatpush1.bf16.msra.mxu0 %v5830_v62  ;;  %4014 = vmatpush1.bf16.msra.mxu1 %v5833_v63  ;;  %v5920_v62 = vld [vmem:[%s6897_s28 + $0x760] ss:$16 sps:$4 sm:$0xff]   ;;  %v5923_v63 = vld [vmem:[%s6897_s28 + $0x768] ss:$16 sps:$4 sm:$0xff]  }
 0x170   : > { %3671 = vmatprep.subr.bf16.mxu0 %v5838_v0  ;;  %4015 = vmatprep.subr.bf16.mxu1 %v5841_v1  ;;  %v5928_v0 = vld [vmem:[%s6897_s28 + $0x784] ss:$16 sps:$4 sm:$0xff]   ;;  %v5931_v1 = vld [vmem:[%s6897_s28 + $0x78c] ss:$16 sps:$4 sm:$0xff]  }
 0x173   : > { %3672 = vmatpush1.bf16.msra.mxu0 %v5836_v2  ;;  %4016 = vmatpush1.bf16.msra.mxu1 %v5839_v3  ;;  %v5926_v2 = vld [vmem:[%s6897_s28 + $0x780] ss:$16 sps:$4 sm:$0xff]   ;;  %v5929_v3 = vld [vmem:[%s6897_s28 + $0x788] ss:$16 sps:$4 sm:$0xff]  }
 0x174   : > { %3673 = vmatprep.subr.bf16.mxu0 %v5844_v4  ;;  %4017 = vmatprep.subr.bf16.mxu1 %v5847_v5  ;;  %v5934_v4 = vld [vmem:[%s6897_s28 + $0x7a4] ss:$16 sps:$4 sm:$0xff]   ;;  %v5937_v5 = vld [vmem:[%s6897_s28 + $0x7ac] ss:$16 sps:$4 sm:$0xff]  }
 0x177   : > { %3674 = vmatpush1.bf16.msra.mxu0 %v5842_v6  ;;  %4018 = vmatpush1.bf16.msra.mxu1 %v5845_v7  ;;  %v5932_v6 = vld [vmem:[%s6897_s28 + $0x7a0] ss:$16 sps:$4 sm:$0xff]   ;;  %v5935_v7 = vld [vmem:[%s6897_s28 + $0x7a8] ss:$16 sps:$4 sm:$0xff]  }
 0x178   : > { %3675 = vmatprep.subr.bf16.mxu0 %v5850_v8  ;;  %4019 = vmatprep.subr.bf16.mxu1 %v5853_v9  ;;  %v5940_v8 = vld [vmem:[%s6897_s28 + $0x7c4] ss:$16 sps:$4 sm:$0xff]   ;;  %v5943_v9 = vld [vmem:[%s6897_s28 + $0x7cc] ss:$16 sps:$4 sm:$0xff]  }
 0x17b   : > { %3676 = vmatpush1.bf16.msra.mxu0 %v5848_v10  ;;  %4020 = vmatpush1.bf16.msra.mxu1 %v5851_v11  ;;  %v5938_v10 = vld [vmem:[%s6897_s28 + $0x7c0] ss:$16 sps:$4 sm:$0xff]   ;;  %v5941_v11 = vld [vmem:[%s6897_s28 + $0x7c8] ss:$16 sps:$4 sm:$0xff]  }
 0x17c   : > { %3688 = vmatprep.subr.bf16.mxu0 %v5856_v12  ;;  %4032 = vmatprep.subr.bf16.mxu1 %v5859_v13  ;;  %v5946_v12 = vld [vmem:[%s6897_s28 + $0x7e4] ss:$16 sps:$4 sm:$0xff]   ;;  %v5949_v13 = vld [vmem:[%s6897_s28 + $0x7ec] ss:$16 sps:$4 sm:$0xff]  }
 0x17e   : > { %3678 = vmatmul.mubr.bf16.vlgmr.msra.gmra.mrb[0].mxu0 %v4801_v18  ;;  %4022 = vmatmul.mubr.bf16.vlgmr.msra.gmra.mrb[0].mxu1 %v4801_v18  ;;  %v5952_v18 = vld [vmem:[%s6897_s28 + $0x804] ss:$16 sps:$4 sm:$0xff]  }
 0x17f   : > { %3689 = vmatpush1.bf16.msra.mxu0 %v5854_v14  ;;  %4033 = vmatpush1.bf16.msra.mxu1 %v5857_v17  ;;  %v5944_v14 = vld [vmem:[%s6897_s28 + $0x7e0] ss:$16 sps:$4 sm:$0xff]   ;;  %v5947_v17 = vld [vmem:[%s6897_s28 + $0x7e8] ss:$16 sps:$4 sm:$0xff]  }
 0x180   : > { %3690 = vmatprep.subr.bf16.mxu0 %v5862_v21  ;;  %4034 = vmatprep.subr.bf16.mxu1 %v5865_v22  ;;  %v5955_v21 = vld [vmem:[%s6897_s28 + $0x80c] ss:$16 sps:$4 sm:$0xff]   ;;  %v7197_v22 = vld [vmem:[#allocation3 + $0x20] sm:$0xff] }
 0x181   : > { %3720 = vmatprep.mubr.bf16.mxu0 %v4804_v23  ;;  %4064 = vmatprep.mubr.bf16.mxu1 %v4804_v23  ;;  %v4803_v23 = vcombine.low %v7129_v19, %v7131_v20  ;;  %v5956_v19 = vld [vmem:[%s6897_s28 + $0x820] ss:$16 sps:$4 sm:$0xff]   ;;  %v5959_v20 = vld [vmem:[%s6897_s28 + $0x828] ss:$16 sps:$4 sm:$0xff]  }
 0x183   : > { %3691 = vmatpush1.bf16.msra.mxu0 %v5860_v15  ;;  %4035 = vmatpush1.bf16.msra.mxu1 %v5863_v16  ;;  %v7201_v15 = vld [vmem:[#allocation3 + $0x60] sm:$0xff] }
 0x184   : > { %3692 = vmatprep.subr.bf16.mxu0 %v5868_v24  ;;  %4036 = vmatprep.subr.bf16.mxu1 %v5871_v25  ;;  %v5950_v16 = vld [vmem:[%s6897_s28 + $0x800] ss:$16 sps:$4 sm:$0xff]   ;;  %v5953_v24 = vld [vmem:[%s6897_s28 + $0x808] ss:$16 sps:$4 sm:$0xff]   ;;  %v5958_v25 = vld [vmem:[%s6897_s28 + $0x824] ss:$16 sps:$4 sm:$0xff]  }
 0x187   : > { %3693 = vmatpush1.bf16.msra.mxu0 %v5866_v26  ;;  %4037 = vmatpush1.bf16.msra.mxu1 %v5869_v27  ;;  %v5961_v26 = vld [vmem:[%s6897_s28 + $0x82c] ss:$16 sps:$4 sm:$0xff]   ;;  %v4806_v27 = vcombine.high %v7197_v22, %v7201_v15 }
 0x188   : > { %3694 = vmatprep.subr.bf16.mxu0 %v5874_v28  ;;  %4038 = vmatprep.subr.bf16.mxu1 %v5877_v29  ;;  %v5964_v28 = vld [vmem:[%s6897_s28 + $0x844] ss:$16 sps:$4 sm:$0xff]   ;;  %v5967_v29 = vld [vmem:[%s6897_s28 + $0x84c] ss:$16 sps:$4 sm:$0xff]  }
 0x18b   : > { %3695 = vmatpush1.bf16.msra.mxu0 %v5872_v30  ;;  %4039 = vmatpush1.bf16.msra.mxu1 %v5875_v31  ;;  %v5962_v30 = vld [vmem:[%s6897_s28 + $0x840] ss:$16 sps:$4 sm:$0xff]   ;;  %v5965_v31 = vld [vmem:[%s6897_s28 + $0x848] ss:$16 sps:$4 sm:$0xff]  }
 0x18c   : > { %3696 = vmatprep.subr.bf16.mxu0 %v5880_v32  ;;  %4040 = vmatprep.subr.bf16.mxu1 %v5883_v33  ;;  %v5970_v32 = vld [vmem:[%s6897_s28 + $0x864] ss:$16 sps:$4 sm:$0xff]   ;;  %v5973_v33 = vld [vmem:[%s6897_s28 + $0x86c] ss:$16 sps:$4 sm:$0xff]  }
 0x18f   : > { %3697 = vmatpush1.bf16.msra.mxu0 %v5878_v34  ;;  %4041 = vmatpush1.bf16.msra.mxu1 %v5881_v35  ;;  %v5968_v34 = vld [vmem:[%s6897_s28 + $0x860] ss:$16 sps:$4 sm:$0xff]   ;;  %v5971_v35 = vld [vmem:[%s6897_s28 + $0x868] ss:$16 sps:$4 sm:$0xff]  }
 0x190   : > { %3698 = vmatprep.subr.bf16.mxu0 %v5886_v36  ;;  %4042 = vmatprep.subr.bf16.mxu1 %v5889_v37  ;;  %v5976_v36 = vld [vmem:[%s6897_s28 + $0x884] ss:$16 sps:$4 sm:$0xff]   ;;  %v5979_v37 = vld [vmem:[%s6897_s28 + $0x88c] ss:$16 sps:$4 sm:$0xff]  }
 0x193   : > { %3699 = vmatpush1.bf16.msra.mxu0 %v5884_v38  ;;  %4043 = vmatpush1.bf16.msra.mxu1 %v5887_v39  ;;  %v5974_v38 = vld [vmem:[%s6897_s28 + $0x880] ss:$16 sps:$4 sm:$0xff]   ;;  %v5977_v39 = vld [vmem:[%s6897_s28 + $0x888] ss:$16 sps:$4 sm:$0xff]  }
 0x194   : > { %3700 = vmatprep.subr.bf16.mxu0 %v5892_v40  ;;  %4044 = vmatprep.subr.bf16.mxu1 %v5895_v41  ;;  %v5982_v40 = vld [vmem:[%s6897_s28 + $0x8a4] ss:$16 sps:$4 sm:$0xff]   ;;  %v5985_v41 = vld [vmem:[%s6897_s28 + $0x8ac] ss:$16 sps:$4 sm:$0xff]  }
 0x197   : > { %3701 = vmatpush1.bf16.msra.mxu0 %v5890_v42  ;;  %4045 = vmatpush1.bf16.msra.mxu1 %v5893_v43  ;;  %v5980_v42 = vld [vmem:[%s6897_s28 + $0x8a0] ss:$16 sps:$4 sm:$0xff]   ;;  %v5983_v43 = vld [vmem:[%s6897_s28 + $0x8a8] ss:$16 sps:$4 sm:$0xff]  }
 0x198   : > { %3702 = vmatprep.subr.bf16.mxu0 %v5898_v44  ;;  %4046 = vmatprep.subr.bf16.mxu1 %v5901_v45  ;;  %v5988_v44 = vld [vmem:[%s6897_s28 + $0x8c4] ss:$16 sps:$4 sm:$0xff]   ;;  %v5991_v45 = vld [vmem:[%s6897_s28 + $0x8cc] ss:$16 sps:$4 sm:$0xff]  }
 0x19b   : > { %3703 = vmatpush1.bf16.msra.mxu0 %v5896_v46  ;;  %4047 = vmatpush1.bf16.msra.mxu1 %v5899_v47  ;;  %v5986_v46 = vld [vmem:[%s6897_s28 + $0x8c0] ss:$16 sps:$4 sm:$0xff]   ;;  %v5989_v47 = vld [vmem:[%s6897_s28 + $0x8c8] ss:$16 sps:$4 sm:$0xff]  }
 0x19c   : > { %3704 = vmatprep.subr.bf16.mxu0 %v5904_v48  ;;  %4048 = vmatprep.subr.bf16.mxu1 %v5907_v49  ;;  %v5994_v48 = vld [vmem:[%s6897_s28 + $0x8e4] ss:$16 sps:$4 sm:$0xff]   ;;  %v5997_v49 = vld [vmem:[%s6897_s28 + $0x8ec] ss:$16 sps:$4 sm:$0xff]  }
 0x19f   : > { %3705 = vmatpush1.bf16.msra.mxu0 %v5902_v50  ;;  %4049 = vmatpush1.bf16.msra.mxu1 %v5905_v51  ;;  %v5992_v50 = vld [vmem:[%s6897_s28 + $0x8e0] ss:$16 sps:$4 sm:$0xff]   ;;  %v5995_v51 = vld [vmem:[%s6897_s28 + $0x8e8] ss:$16 sps:$4 sm:$0xff]  }
 0x1a0   : > { %3706 = vmatprep.subr.bf16.mxu0 %v5910_v52  ;;  %4050 = vmatprep.subr.bf16.mxu1 %v5913_v53  ;;  %v6000_v52 = vld [vmem:[%s6897_s28 + $0x904] ss:$16 sps:$4 sm:$0xff]   ;;  %v6003_v53 = vld [vmem:[%s6897_s28 + $0x90c] ss:$16 sps:$4 sm:$0xff]  }
 0x1a3   : > { %3707 = vmatpush1.bf16.msra.mxu0 %v5908_v54  ;;  %4051 = vmatpush1.bf16.msra.mxu1 %v5911_v55  ;;  %v5998_v54 = vld [vmem:[%s6897_s28 + $0x900] ss:$16 sps:$4 sm:$0xff]   ;;  %v6001_v55 = vld [vmem:[%s6897_s28 + $0x908] ss:$16 sps:$4 sm:$0xff]  }
 0x1a4   : > { %3708 = vmatprep.subr.bf16.mxu0 %v5916_v56  ;;  %4052 = vmatprep.subr.bf16.mxu1 %v5919_v57  ;;  %v6006_v56 = vld [vmem:[%s6897_s28 + $0x924] ss:$16 sps:$4 sm:$0xff]   ;;  %v6009_v57 = vld [vmem:[%s6897_s28 + $0x92c] ss:$16 sps:$4 sm:$0xff]  }
 0x1a7   : > { %3709 = vmatpush1.bf16.msra.mxu0 %v5914_v58  ;;  %4053 = vmatpush1.bf16.msra.mxu1 %v5917_v59  ;;  %v6004_v58 = vld [vmem:[%s6897_s28 + $0x920] ss:$16 sps:$4 sm:$0xff]   ;;  %v6007_v59 = vld [vmem:[%s6897_s28 + $0x928] ss:$16 sps:$4 sm:$0xff]  }
 0x1a8   : > { %3710 = vmatprep.subr.bf16.mxu0 %v5922_v60  ;;  %4054 = vmatprep.subr.bf16.mxu1 %v5925_v61  ;;  %v6012_v60 = vld [vmem:[%s6897_s28 + $0x944] ss:$16 sps:$4 sm:$0xff]   ;;  %v6015_v61 = vld [vmem:[%s6897_s28 + $0x94c] ss:$16 sps:$4 sm:$0xff]  }
 0x1ab   : > { %3711 = vmatpush1.bf16.msra.mxu0 %v5920_v62  ;;  %4055 = vmatpush1.bf16.msra.mxu1 %v5923_v63  ;;  %v6010_v62 = vld [vmem:[%s6897_s28 + $0x940] ss:$16 sps:$4 sm:$0xff]   ;;  %v6013_v63 = vld [vmem:[%s6897_s28 + $0x948] ss:$16 sps:$4 sm:$0xff]  }
 0x1ac   : > { %3712 = vmatprep.subr.bf16.mxu0 %v5928_v0  ;;  %4056 = vmatprep.subr.bf16.mxu1 %v5931_v1  ;;  %v6018_v0 = vld [vmem:[%s6897_s28 + $0x964] ss:$16 sps:$4 sm:$0xff]   ;;  %v6021_v1 = vld [vmem:[%s6897_s28 + $0x96c] ss:$16 sps:$4 sm:$0xff]  }
 0x1af   : > { %3713 = vmatpush1.bf16.msra.mxu0 %v5926_v2  ;;  %4057 = vmatpush1.bf16.msra.mxu1 %v5929_v3  ;;  %v6016_v2 = vld [vmem:[%s6897_s28 + $0x960] ss:$16 sps:$4 sm:$0xff]   ;;  %v6019_v3 = vld [vmem:[%s6897_s28 + $0x968] ss:$16 sps:$4 sm:$0xff]  }
 0x1b0   : > { %3714 = vmatprep.subr.bf16.mxu0 %v5934_v4  ;;  %4058 = vmatprep.subr.bf16.mxu1 %v5937_v5  ;;  %v6024_v4 = vld [vmem:[%s6897_s28 + $0x984] ss:$16 sps:$4 sm:$0xff]   ;;  %v6027_v5 = vld [vmem:[%s6897_s28 + $0x98c] ss:$16 sps:$4 sm:$0xff]  }
 0x1b3   : > { %3715 = vmatpush1.bf16.msra.mxu0 %v5932_v6  ;;  %4059 = vmatpush1.bf16.msra.mxu1 %v5935_v7  ;;  %v6022_v6 = vld [vmem:[%s6897_s28 + $0x980] ss:$16 sps:$4 sm:$0xff]   ;;  %v6025_v7 = vld [vmem:[%s6897_s28 + $0x988] ss:$16 sps:$4 sm:$0xff]  }
 0x1b4   : > { %3716 = vmatprep.subr.bf16.mxu0 %v5940_v8  ;;  %4060 = vmatprep.subr.bf16.mxu1 %v5943_v9  ;;  %v6030_v8 = vld [vmem:[%s6897_s28 + $0x9a4] ss:$16 sps:$4 sm:$0xff]   ;;  %v6033_v9 = vld [vmem:[%s6897_s28 + $0x9ac] ss:$16 sps:$4 sm:$0xff]  }
 0x1b7   : > { %3717 = vmatpush1.bf16.msra.mxu0 %v5938_v10  ;;  %4061 = vmatpush1.bf16.msra.mxu1 %v5941_v11  ;;  %v6028_v10 = vld [vmem:[%s6897_s28 + $0x9a0] ss:$16 sps:$4 sm:$0xff]   ;;  %v6031_v11 = vld [vmem:[%s6897_s28 + $0x9a8] ss:$16 sps:$4 sm:$0xff]  }
 0x1b8   : > { %3718 = vmatprep.subr.bf16.mxu0 %v5946_v12  ;;  %4062 = vmatprep.subr.bf16.mxu1 %v5949_v13  ;;  %v6036_v12 = vld [vmem:[%s6897_s28 + $0x9c4] ss:$16 sps:$4 sm:$0xff]   ;;  %v6039_v13 = vld [vmem:[%s6897_s28 + $0x9cc] ss:$16 sps:$4 sm:$0xff]  }
 0x1bb   : > { %3719 = vmatpush1.bf16.msra.mxu0 %v5944_v14  ;;  %4063 = vmatpush1.bf16.msra.mxu1 %v5947_v17  ;;  %v6034_v14 = vld [vmem:[%s6897_s28 + $0x9c0] ss:$16 sps:$4 sm:$0xff]   ;;  %v6037_v17 = vld [vmem:[%s6897_s28 + $0x9c8] ss:$16 sps:$4 sm:$0xff]  }
 0x1bc   : > { %3731 = vmatprep.subr.bf16.mxu0 %v5952_v18  ;;  %4075 = vmatprep.subr.bf16.mxu1 %v5955_v21  ;;  %v6042_v18 = vld [vmem:[%s6897_s28 + $0x9e4] ss:$16 sps:$4 sm:$0xff]   ;;  %v6045_v21 = vld [vmem:[%s6897_s28 + $0x9ec] ss:$16 sps:$4 sm:$0xff]  }
 0x1be   : > { %3721 = vmatmul.mubr.bf16.vlgmr.msra.gmra.mrb[0].mxu0 %v4803_v23  ;;  %4065 = vmatmul.mubr.bf16.vlgmr.msra.gmra.mrb[0].mxu1 %v4803_v23  ;;  %v6040_v23 = vld [vmem:[%s6897_s28 + $0x9e0] ss:$16 sps:$4 sm:$0xff]  }
 0x1bf   : > { %3732 = vmatpush1.bf16.msra.mxu0 %v5950_v16  ;;  %4076 = vmatpush1.bf16.msra.mxu1 %v5953_v24  ;;  %v6043_v16 = vld [vmem:[%s6897_s28 + $0x9e8] ss:$16 sps:$4 sm:$0xff]   ;;  %v6048_v24 = vld [vmem:[%s6897_s28 + $0xa04] ss:$16 sps:$4 sm:$0xff]  }
 0x1c0   : > { %3733 = vmatprep.subr.bf16.mxu0 %v5958_v25  ;;  %4077 = vmatprep.subr.bf16.mxu1 %v5961_v26  ;;  %v6051_v25 = vld [vmem:[%s6897_s28 + $0xa0c] ss:$16 sps:$4 sm:$0xff]  }
 0x1c1   : > { %3763 = vmatprep.mubr.bf16.mxu0 %v4806_v27  ;;  %4107 = vmatprep.mubr.bf16.mxu1 %v4806_v27  ;;  %v7269_v26 = vld [vmem:[#allocation3 + $0x28] sm:$0xff] }
 0x1c2   : > { %v7271_v27 = vld [vmem:[#allocation3 + $0x68] sm:$0xff] }
 0x1c3   : > { %3734 = vmatpush1.bf16.msra.mxu0 %v5956_v19  ;;  %4078 = vmatpush1.bf16.msra.mxu1 %v5959_v20  ;;  %v4805_v19 = vcombine.low %v7197_v22, %v7201_v15  ;;  %v6046_v20 = vld [vmem:[%s6897_s28 + $0xa00] ss:$16 sps:$4 sm:$0xff]   ;;  %v6055_v15 = vld [vmem:[%s6897_s28 + $0xa28] ss:$16 sps:$4 sm:$0xff]  }
 0x1c4   : > { %3735 = vmatprep.subr.bf16.mxu0 %v5964_v28  ;;  %4079 = vmatprep.subr.bf16.mxu1 %v5967_v29  ;;  %v6049_v28 = vld [vmem:[%s6897_s28 + $0xa08] ss:$16 sps:$4 sm:$0xff]   ;;  %v6054_v29 = vld [vmem:[%s6897_s28 + $0xa24] ss:$16 sps:$4 sm:$0xff]   ;;  %v6052_v22 = vld [vmem:[%s6897_s28 + $0xa20] ss:$16 sps:$4 sm:$0xff]  }
 0x1c7   : > { %3736 = vmatpush1.bf16.msra.mxu0 %v5962_v30  ;;  %4080 = vmatpush1.bf16.msra.mxu1 %v5965_v31  ;;  %v6057_v30 = vld [vmem:[%s6897_s28 + $0xa2c] ss:$16 sps:$4 sm:$0xff]   ;;  %v4808_v31 = vcombine.high %v7269_v26, %v7271_v27 }
 0x1c8   : > { %3737 = vmatprep.subr.bf16.mxu0 %v5970_v32  ;;  %4081 = vmatprep.subr.bf16.mxu1 %v5973_v33  ;;  %v6060_v32 = vld [vmem:[%s6897_s28 + $0xa44] ss:$16 sps:$4 sm:$0xff]   ;;  %v6063_v33 = vld [vmem:[%s6897_s28 + $0xa4c] ss:$16 sps:$4 sm:$0xff]  }
 0x1cb   : > { %3738 = vmatpush1.bf16.msra.mxu0 %v5968_v34  ;;  %4082 = vmatpush1.bf16.msra.mxu1 %v5971_v35  ;;  %v6058_v34 = vld [vmem:[%s6897_s28 + $0xa40] ss:$16 sps:$4 sm:$0xff]   ;;  %v6061_v35 = vld [vmem:[%s6897_s28 + $0xa48] ss:$16 sps:$4 sm:$0xff]  }
 0x1cc   : > { %3739 = vmatprep.subr.bf16.mxu0 %v5976_v36  ;;  %4083 = vmatprep.subr.bf16.mxu1 %v5979_v37  ;;  %v6066_v36 = vld [vmem:[%s6897_s28 + $0xa64] ss:$16 sps:$4 sm:$0xff]   ;;  %v6069_v37 = vld [vmem:[%s6897_s28 + $0xa6c] ss:$16 sps:$4 sm:$0xff]  }
 0x1cf   : > { %3740 = vmatpush1.bf16.msra.mxu0 %v5974_v38  ;;  %4084 = vmatpush1.bf16.msra.mxu1 %v5977_v39  ;;  %v6064_v38 = vld [vmem:[%s6897_s28 + $0xa60] ss:$16 sps:$4 sm:$0xff]   ;;  %v6067_v39 = vld [vmem:[%s6897_s28 + $0xa68] ss:$16 sps:$4 sm:$0xff]  }
 0x1d0   : > { %3741 = vmatprep.subr.bf16.mxu0 %v5982_v40  ;;  %4085 = vmatprep.subr.bf16.mxu1 %v5985_v41  ;;  %v6072_v40 = vld [vmem:[%s6897_s28 + $0xa84] ss:$16 sps:$4 sm:$0xff]   ;;  %v6075_v41 = vld [vmem:[%s6897_s28 + $0xa8c] ss:$16 sps:$4 sm:$0xff]  }
 0x1d3   : > { %3742 = vmatpush1.bf16.msra.mxu0 %v5980_v42  ;;  %4086 = vmatpush1.bf16.msra.mxu1 %v5983_v43  ;;  %v6070_v42 = vld [vmem:[%s6897_s28 + $0xa80] ss:$16 sps:$4 sm:$0xff]   ;;  %v6073_v43 = vld [vmem:[%s6897_s28 + $0xa88] ss:$16 sps:$4 sm:$0xff]  }
 0x1d4   : > { %3743 = vmatprep.subr.bf16.mxu0 %v5988_v44  ;;  %4087 = vmatprep.subr.bf16.mxu1 %v5991_v45  ;;  %v6078_v44 = vld [vmem:[%s6897_s28 + $0xaa4] ss:$16 sps:$4 sm:$0xff]   ;;  %v6081_v45 = vld [vmem:[%s6897_s28 + $0xaac] ss:$16 sps:$4 sm:$0xff]  }
 0x1d7   : > { %3744 = vmatpush1.bf16.msra.mxu0 %v5986_v46  ;;  %4088 = vmatpush1.bf16.msra.mxu1 %v5989_v47  ;;  %v6076_v46 = vld [vmem:[%s6897_s28 + $0xaa0] ss:$16 sps:$4 sm:$0xff]   ;;  %v6079_v47 = vld [vmem:[%s6897_s28 + $0xaa8] ss:$16 sps:$4 sm:$0xff]  }
 0x1d8   : > { %3745 = vmatprep.subr.bf16.mxu0 %v5994_v48  ;;  %4089 = vmatprep.subr.bf16.mxu1 %v5997_v49  ;;  %v6084_v48 = vld [vmem:[%s6897_s28 + $0xac4] ss:$16 sps:$4 sm:$0xff]   ;;  %v6087_v49 = vld [vmem:[%s6897_s28 + $0xacc] ss:$16 sps:$4 sm:$0xff]  }
 0x1db   : > { %3746 = vmatpush1.bf16.msra.mxu0 %v5992_v50  ;;  %4090 = vmatpush1.bf16.msra.mxu1 %v5995_v51  ;;  %v6082_v50 = vld [vmem:[%s6897_s28 + $0xac0] ss:$16 sps:$4 sm:$0xff]   ;;  %v6085_v51 = vld [vmem:[%s6897_s28 + $0xac8] ss:$16 sps:$4 sm:$0xff]  }
 0x1dc   : > { %3747 = vmatprep.subr.bf16.mxu0 %v6000_v52  ;;  %4091 = vmatprep.subr.bf16.mxu1 %v6003_v53  ;;  %v6090_v52 = vld [vmem:[%s6897_s28 + $0xae4] ss:$16 sps:$4 sm:$0xff]   ;;  %v6093_v53 = vld [vmem:[%s6897_s28 + $0xaec] ss:$16 sps:$4 sm:$0xff]  }
 0x1df   : > { %3748 = vmatpush1.bf16.msra.mxu0 %v5998_v54  ;;  %4092 = vmatpush1.bf16.msra.mxu1 %v6001_v55  ;;  %v6088_v54 = vld [vmem:[%s6897_s28 + $0xae0] ss:$16 sps:$4 sm:$0xff]   ;;  %v6091_v55 = vld [vmem:[%s6897_s28 + $0xae8] ss:$16 sps:$4 sm:$0xff]  }
 0x1e0   : > { %3749 = vmatprep.subr.bf16.mxu0 %v6006_v56  ;;  %4093 = vmatprep.subr.bf16.mxu1 %v6009_v57  ;;  %v6096_v56 = vld [vmem:[%s6897_s28 + $0xb04] ss:$16 sps:$4 sm:$0xff]   ;;  %v6099_v57 = vld [vmem:[%s6897_s28 + $0xb0c] ss:$16 sps:$4 sm:$0xff]  }
 0x1e3   : > { %3750 = vmatpush1.bf16.msra.mxu0 %v6004_v58  ;;  %4094 = vmatpush1.bf16.msra.mxu1 %v6007_v59  ;;  %v6094_v58 = vld [vmem:[%s6897_s28 + $0xb00] ss:$16 sps:$4 sm:$0xff]   ;;  %v6097_v59 = vld [vmem:[%s6897_s28 + $0xb08] ss:$16 sps:$4 sm:$0xff]  }
 0x1e4   : > { %3751 = vmatprep.subr.bf16.mxu0 %v6012_v60  ;;  %4095 = vmatprep.subr.bf16.mxu1 %v6015_v61  ;;  %v6102_v60 = vld [vmem:[%s6897_s28 + $0xb24] ss:$16 sps:$4 sm:$0xff]   ;;  %v6105_v61 = vld [vmem:[%s6897_s28 + $0xb2c] ss:$16 sps:$4 sm:$0xff]  }
 0x1e7   : > { %3752 = vmatpush1.bf16.msra.mxu0 %v6010_v62  ;;  %4096 = vmatpush1.bf16.msra.mxu1 %v6013_v63  ;;  %v6100_v62 = vld [vmem:[%s6897_s28 + $0xb20] ss:$16 sps:$4 sm:$0xff]   ;;  %v6103_v63 = vld [vmem:[%s6897_s28 + $0xb28] ss:$16 sps:$4 sm:$0xff]  }
 0x1e8   : > { %3753 = vmatprep.subr.bf16.mxu0 %v6018_v0  ;;  %4097 = vmatprep.subr.bf16.mxu1 %v6021_v1  ;;  %v6108_v0 = vld [vmem:[%s6897_s28 + $0xb44] ss:$16 sps:$4 sm:$0xff]   ;;  %v6111_v1 = vld [vmem:[%s6897_s28 + $0xb4c] ss:$16 sps:$4 sm:$0xff]  }
 0x1eb   : > { %3754 = vmatpush1.bf16.msra.mxu0 %v6016_v2  ;;  %4098 = vmatpush1.bf16.msra.mxu1 %v6019_v3  ;;  %v6106_v2 = vld [vmem:[%s6897_s28 + $0xb40] ss:$16 sps:$4 sm:$0xff]   ;;  %v6109_v3 = vld [vmem:[%s6897_s28 + $0xb48] ss:$16 sps:$4 sm:$0xff]  }
 0x1ec   : > { %3755 = vmatprep.subr.bf16.mxu0 %v6024_v4  ;;  %4099 = vmatprep.subr.bf16.mxu1 %v6027_v5  ;;  %v6114_v4 = vld [vmem:[%s6897_s28 + $0xb64] ss:$16 sps:$4 sm:$0xff]   ;;  %v6117_v5 = vld [vmem:[%s6897_s28 + $0xb6c] ss:$16 sps:$4 sm:$0xff]  }
 0x1ef   : > { %3756 = vmatpush1.bf16.msra.mxu0 %v6022_v6  ;;  %4100 = vmatpush1.bf16.msra.mxu1 %v6025_v7  ;;  %v6112_v6 = vld [vmem:[%s6897_s28 + $0xb60] ss:$16 sps:$4 sm:$0xff]   ;;  %v6115_v7 = vld [vmem:[%s6897_s28 + $0xb68] ss:$16 sps:$4 sm:$0xff]  }
 0x1f0   : > { %3757 = vmatprep.subr.bf16.mxu0 %v6030_v8  ;;  %4101 = vmatprep.subr.bf16.mxu1 %v6033_v9  ;;  %v6120_v8 = vld [vmem:[%s6897_s28 + $0xb84] ss:$16 sps:$4 sm:$0xff]   ;;  %v6123_v9 = vld [vmem:[%s6897_s28 + $0xb8c] ss:$16 sps:$4 sm:$0xff]  }
 0x1f3   : > { %3758 = vmatpush1.bf16.msra.mxu0 %v6028_v10  ;;  %4102 = vmatpush1.bf16.msra.mxu1 %v6031_v11  ;;  %v6118_v10 = vld [vmem:[%s6897_s28 + $0xb80] ss:$16 sps:$4 sm:$0xff]   ;;  %v6121_v11 = vld [vmem:[%s6897_s28 + $0xb88] ss:$16 sps:$4 sm:$0xff]  }
 0x1f4   : > { %3759 = vmatprep.subr.bf16.mxu0 %v6036_v12  ;;  %4103 = vmatprep.subr.bf16.mxu1 %v6039_v13  ;;  %v6126_v12 = vld [vmem:[%s6897_s28 + $0xba4] ss:$16 sps:$4 sm:$0xff]   ;;  %v6129_v13 = vld [vmem:[%s6897_s28 + $0xbac] ss:$16 sps:$4 sm:$0xff]  }
 0x1f7   : > { %3760 = vmatpush1.bf16.msra.mxu0 %v6034_v14  ;;  %4104 = vmatpush1.bf16.msra.mxu1 %v6037_v17  ;;  %v6124_v14 = vld [vmem:[%s6897_s28 + $0xba0] ss:$16 sps:$4 sm:$0xff]   ;;  %v6127_v17 = vld [vmem:[%s6897_s28 + $0xba8] ss:$16 sps:$4 sm:$0xff]  }
 0x1f8   : > { %3761 = vmatprep.subr.bf16.mxu0 %v6042_v18  ;;  %4105 = vmatprep.subr.bf16.mxu1 %v6045_v21  ;;  %v6132_v18 = vld [vmem:[%s6897_s28 + $0xbc4] ss:$16 sps:$4 sm:$0xff]   ;;  %v6135_v21 = vld [vmem:[%s6897_s28 + $0xbcc] ss:$16 sps:$4 sm:$0xff]  }
 0x1fb   : > { %3762 = vmatpush1.bf16.msra.mxu0 %v6040_v23  ;;  %4106 = vmatpush1.bf16.msra.mxu1 %v6043_v16  ;;  %v6130_v23 = vld [vmem:[%s6897_s28 + $0xbc0] ss:$16 sps:$4 sm:$0xff]   ;;  %v6133_v16 = vld [vmem:[%s6897_s28 + $0xbc8] ss:$16 sps:$4 sm:$0xff]  }
 0x1fc   : > { %3774 = vmatprep.subr.bf16.mxu0 %v6048_v24  ;;  %4118 = vmatprep.subr.bf16.mxu1 %v6051_v25  ;;  %v6138_v24 = vld [vmem:[%s6897_s28 + $0xbe4] ss:$16 sps:$4 sm:$0xff]   ;;  %v6141_v25 = vld [vmem:[%s6897_s28 + $0xbec] ss:$16 sps:$4 sm:$0xff]  }
 0x1fe   : > { %3764 = vmatmul.mubr.bf16.vlgmr.msra.gmra.mrb[0].mxu0 %v4805_v19  ;;  %4108 = vmatmul.mubr.bf16.vlgmr.msra.gmra.mrb[0].mxu1 %v4805_v19  ;;  %v6136_v19 = vld [vmem:[%s6897_s28 + $0xbe0] ss:$16 sps:$4 sm:$0xff]  }
 0x1ff   : > { %3775 = vmatpush1.bf16.msra.mxu0 %v6046_v20  ;;  %4119 = vmatpush1.bf16.msra.mxu1 %v6049_v28  ;;  %v6139_v20 = vld [vmem:[%s6897_s28 + $0xbe8] ss:$16 sps:$4 sm:$0xff]   ;;  %v6144_v28 = vld [vmem:[%s6897_s28 + $0xc04] ss:$16 sps:$4 sm:$0xff]  }
 0x200   : > { %3776 = vmatprep.subr.bf16.mxu0 %v6054_v29  ;;  %4120 = vmatprep.subr.bf16.mxu1 %v6057_v30  ;;  %v6147_v29 = vld [vmem:[%s6897_s28 + $0xc0c] ss:$16 sps:$4 sm:$0xff]   ;;  %v4807_v30 = vcombine.low %v7269_v26, %v7271_v27  ;;  %v6148_v27 = vld [vmem:[%s6897_s28 + $0xc20] ss:$16 sps:$4 sm:$0xff]  }
 0x201   : > { %3806 = vmatprep.mubr.bf16.mxu0 %v4808_v31  ;;  %4150 = vmatprep.mubr.bf16.mxu1 %v4808_v31  ;;  %v7343_v31 = vld [vmem:[#allocation3 + $0x30] sm:$0xff] }
 0x203   : > { %3777 = vmatpush1.bf16.msra.mxu0 %v6052_v22  ;;  %4121 = vmatpush1.bf16.msra.mxu1 %v6055_v15  ;;  %v7345_v22 = vld [vmem:[#allocation3 + $0x70] sm:$0xff] }
 0x204   : > { %3778 = vmatprep.subr.bf16.mxu0 %v6060_v32  ;;  %4122 = vmatprep.subr.bf16.mxu1 %v6063_v33  ;;  %v6142_v15 = vld [vmem:[%s6897_s28 + $0xc00] ss:$16 sps:$4 sm:$0xff]   ;;  %v6145_v32 = vld [vmem:[%s6897_s28 + $0xc08] ss:$16 sps:$4 sm:$0xff]   ;;  %v6150_v33 = vld [vmem:[%s6897_s28 + $0xc24] ss:$16 sps:$4 sm:$0xff]   ;;  %v4810_v26 = vcombine.high %v7343_v31, %v7345_v22 }
 0x207   : > { %3779 = vmatpush1.bf16.msra.mxu0 %v6058_v34  ;;  %4123 = vmatpush1.bf16.msra.mxu1 %v6061_v35  ;;  %v6153_v34 = vld [vmem:[%s6897_s28 + $0xc2c] ss:$16 sps:$4 sm:$0xff]   ;;  %v6151_v35 = vld [vmem:[%s6897_s28 + $0xc28] ss:$16 sps:$4 sm:$0xff]  }
 0x208   : > { %3780 = vmatprep.subr.bf16.mxu0 %v6066_v36  ;;  %4124 = vmatprep.subr.bf16.mxu1 %v6069_v37  ;;  %v6156_v36 = vld [vmem:[%s6897_s28 + $0xc44] ss:$16 sps:$4 sm:$0xff]   ;;  %v6159_v37 = vld [vmem:[%s6897_s28 + $0xc4c] ss:$16 sps:$4 sm:$0xff]  }
 0x20b   : > { %3781 = vmatpush1.bf16.msra.mxu0 %v6064_v38  ;;  %4125 = vmatpush1.bf16.msra.mxu1 %v6067_v39  ;;  %v6154_v38 = vld [vmem:[%s6897_s28 + $0xc40] ss:$16 sps:$4 sm:$0xff]   ;;  %v6157_v39 = vld [vmem:[%s6897_s28 + $0xc48] ss:$16 sps:$4 sm:$0xff]  }
 0x20c   : > { %3782 = vmatprep.subr.bf16.mxu0 %v6072_v40  ;;  %4126 = vmatprep.subr.bf16.mxu1 %v6075_v41  ;;  %v6162_v40 = vld [vmem:[%s6897_s28 + $0xc64] ss:$16 sps:$4 sm:$0xff]   ;;  %v6165_v41 = vld [vmem:[%s6897_s28 + $0xc6c] ss:$16 sps:$4 sm:$0xff]  }
 0x20f   : > { %3783 = vmatpush1.bf16.msra.mxu0 %v6070_v42  ;;  %4127 = vmatpush1.bf16.msra.mxu1 %v6073_v43  ;;  %v6160_v42 = vld [vmem:[%s6897_s28 + $0xc60] ss:$16 sps:$4 sm:$0xff]   ;;  %v6163_v43 = vld [vmem:[%s6897_s28 + $0xc68] ss:$16 sps:$4 sm:$0xff]  }
 0x210   : > { %3784 = vmatprep.subr.bf16.mxu0 %v6078_v44  ;;  %4128 = vmatprep.subr.bf16.mxu1 %v6081_v45  ;;  %v6168_v44 = vld [vmem:[%s6897_s28 + $0xc84] ss:$16 sps:$4 sm:$0xff]   ;;  %v6171_v45 = vld [vmem:[%s6897_s28 + $0xc8c] ss:$16 sps:$4 sm:$0xff]  }
 0x213   : > { %3785 = vmatpush1.bf16.msra.mxu0 %v6076_v46  ;;  %4129 = vmatpush1.bf16.msra.mxu1 %v6079_v47  ;;  %v6166_v46 = vld [vmem:[%s6897_s28 + $0xc80] ss:$16 sps:$4 sm:$0xff]   ;;  %v6169_v47 = vld [vmem:[%s6897_s28 + $0xc88] ss:$16 sps:$4 sm:$0xff]  }
 0x214   : > { %3786 = vmatprep.subr.bf16.mxu0 %v6084_v48  ;;  %4130 = vmatprep.subr.bf16.mxu1 %v6087_v49  ;;  %v6174_v48 = vld [vmem:[%s6897_s28 + $0xca4] ss:$16 sps:$4 sm:$0xff]   ;;  %v6177_v49 = vld [vmem:[%s6897_s28 + $0xcac] ss:$16 sps:$4 sm:$0xff]  }
 0x217   : > { %3787 = vmatpush1.bf16.msra.mxu0 %v6082_v50  ;;  %4131 = vmatpush1.bf16.msra.mxu1 %v6085_v51  ;;  %v6172_v50 = vld [vmem:[%s6897_s28 + $0xca0] ss:$16 sps:$4 sm:$0xff]   ;;  %v6175_v51 = vld [vmem:[%s6897_s28 + $0xca8] ss:$16 sps:$4 sm:$0xff]  }
 0x218   : > { %3788 = vmatprep.subr.bf16.mxu0 %v6090_v52  ;;  %4132 = vmatprep.subr.bf16.mxu1 %v6093_v53  ;;  %v6180_v52 = vld [vmem:[%s6897_s28 + $0xcc4] ss:$16 sps:$4 sm:$0xff]   ;;  %v6183_v53 = vld [vmem:[%s6897_s28 + $0xccc] ss:$16 sps:$4 sm:$0xff]  }
 0x21b   : > { %3789 = vmatpush1.bf16.msra.mxu0 %v6088_v54  ;;  %4133 = vmatpush1.bf16.msra.mxu1 %v6091_v55  ;;  %v6178_v54 = vld [vmem:[%s6897_s28 + $0xcc0] ss:$16 sps:$4 sm:$0xff]   ;;  %v6181_v55 = vld [vmem:[%s6897_s28 + $0xcc8] ss:$16 sps:$4 sm:$0xff]  }
 0x21c   : > { %3790 = vmatprep.subr.bf16.mxu0 %v6096_v56  ;;  %4134 = vmatprep.subr.bf16.mxu1 %v6099_v57  ;;  %v6186_v56 = vld [vmem:[%s6897_s28 + $0xce4] ss:$16 sps:$4 sm:$0xff]   ;;  %v6189_v57 = vld [vmem:[%s6897_s28 + $0xcec] ss:$16 sps:$4 sm:$0xff]  }
 0x21f   : > { %3791 = vmatpush1.bf16.msra.mxu0 %v6094_v58  ;;  %4135 = vmatpush1.bf16.msra.mxu1 %v6097_v59  ;;  %v6184_v58 = vld [vmem:[%s6897_s28 + $0xce0] ss:$16 sps:$4 sm:$0xff]   ;;  %v6187_v59 = vld [vmem:[%s6897_s28 + $0xce8] ss:$16 sps:$4 sm:$0xff]  }
 0x220   : > { %3792 = vmatprep.subr.bf16.mxu0 %v6102_v60  ;;  %4136 = vmatprep.subr.bf16.mxu1 %v6105_v61  ;;  %v6192_v60 = vld [vmem:[%s6897_s28 + $0xd04] ss:$16 sps:$4 sm:$0xff]   ;;  %v6195_v61 = vld [vmem:[%s6897_s28 + $0xd0c] ss:$16 sps:$4 sm:$0xff]  }
 0x223   : > { %3793 = vmatpush1.bf16.msra.mxu0 %v6100_v62  ;;  %4137 = vmatpush1.bf16.msra.mxu1 %v6103_v63  ;;  %v6190_v62 = vld [vmem:[%s6897_s28 + $0xd00] ss:$16 sps:$4 sm:$0xff]   ;;  %v6193_v63 = vld [vmem:[%s6897_s28 + $0xd08] ss:$16 sps:$4 sm:$0xff]  }
 0x224   : > { %3794 = vmatprep.subr.bf16.mxu0 %v6108_v0  ;;  %4138 = vmatprep.subr.bf16.mxu1 %v6111_v1  ;;  %v6198_v0 = vld [vmem:[%s6897_s28 + $0xd24] ss:$16 sps:$4 sm:$0xff]   ;;  %v6201_v1 = vld [vmem:[%s6897_s28 + $0xd2c] ss:$16 sps:$4 sm:$0xff]  }
 0x227   : > { %3795 = vmatpush1.bf16.msra.mxu0 %v6106_v2  ;;  %4139 = vmatpush1.bf16.msra.mxu1 %v6109_v3  ;;  %v6196_v2 = vld [vmem:[%s6897_s28 + $0xd20] ss:$16 sps:$4 sm:$0xff]   ;;  %v6199_v3 = vld [vmem:[%s6897_s28 + $0xd28] ss:$16 sps:$4 sm:$0xff]  }
 0x228   : > { %3796 = vmatprep.subr.bf16.mxu0 %v6114_v4  ;;  %4140 = vmatprep.subr.bf16.mxu1 %v6117_v5  ;;  %v6204_v4 = vld [vmem:[%s6897_s28 + $0xd44] ss:$16 sps:$4 sm:$0xff]   ;;  %v6207_v5 = vld [vmem:[%s6897_s28 + $0xd4c] ss:$16 sps:$4 sm:$0xff]  }
 0x22b   : > { %3797 = vmatpush1.bf16.msra.mxu0 %v6112_v6  ;;  %4141 = vmatpush1.bf16.msra.mxu1 %v6115_v7  ;;  %v6202_v6 = vld [vmem:[%s6897_s28 + $0xd40] ss:$16 sps:$4 sm:$0xff]   ;;  %v6205_v7 = vld [vmem:[%s6897_s28 + $0xd48] ss:$16 sps:$4 sm:$0xff]  }
 0x22c   : > { %3798 = vmatprep.subr.bf16.mxu0 %v6120_v8  ;;  %4142 = vmatprep.subr.bf16.mxu1 %v6123_v9  ;;  %v6210_v8 = vld [vmem:[%s6897_s28 + $0xd64] ss:$16 sps:$4 sm:$0xff]   ;;  %v6213_v9 = vld [vmem:[%s6897_s28 + $0xd6c] ss:$16 sps:$4 sm:$0xff]  }
 0x22f   : > { %3799 = vmatpush1.bf16.msra.mxu0 %v6118_v10  ;;  %4143 = vmatpush1.bf16.msra.mxu1 %v6121_v11  ;;  %v6208_v10 = vld [vmem:[%s6897_s28 + $0xd60] ss:$16 sps:$4 sm:$0xff]   ;;  %v6211_v11 = vld [vmem:[%s6897_s28 + $0xd68] ss:$16 sps:$4 sm:$0xff]  }
 0x230   : > { %3800 = vmatprep.subr.bf16.mxu0 %v6126_v12  ;;  %4144 = vmatprep.subr.bf16.mxu1 %v6129_v13  ;;  %v6216_v12 = vld [vmem:[%s6897_s28 + $0xd84] ss:$16 sps:$4 sm:$0xff]   ;;  %v6219_v13 = vld [vmem:[%s6897_s28 + $0xd8c] ss:$16 sps:$4 sm:$0xff]  }
 0x233   : > { %3801 = vmatpush1.bf16.msra.mxu0 %v6124_v14  ;;  %4145 = vmatpush1.bf16.msra.mxu1 %v6127_v17  ;;  %v6214_v14 = vld [vmem:[%s6897_s28 + $0xd80] ss:$16 sps:$4 sm:$0xff]   ;;  %v6217_v17 = vld [vmem:[%s6897_s28 + $0xd88] ss:$16 sps:$4 sm:$0xff]  }
 0x234   : > { %3802 = vmatprep.subr.bf16.mxu0 %v6132_v18  ;;  %4146 = vmatprep.subr.bf16.mxu1 %v6135_v21  ;;  %v6222_v18 = vld [vmem:[%s6897_s28 + $0xda4] ss:$16 sps:$4 sm:$0xff]   ;;  %v6225_v21 = vld [vmem:[%s6897_s28 + $0xdac] ss:$16 sps:$4 sm:$0xff]  }
 0x237   : > { %3803 = vmatpush1.bf16.msra.mxu0 %v6130_v23  ;;  %4147 = vmatpush1.bf16.msra.mxu1 %v6133_v16  ;;  %v6220_v23 = vld [vmem:[%s6897_s28 + $0xda0] ss:$16 sps:$4 sm:$0xff]   ;;  %v6223_v16 = vld [vmem:[%s6897_s28 + $0xda8] ss:$16 sps:$4 sm:$0xff]  }
 0x238   : > { %3804 = vmatprep.subr.bf16.mxu0 %v6138_v24  ;;  %4148 = vmatprep.subr.bf16.mxu1 %v6141_v25  ;;  %v6228_v24 = vld [vmem:[%s6897_s28 + $0xdc4] ss:$16 sps:$4 sm:$0xff]   ;;  %v6231_v25 = vld [vmem:[%s6897_s28 + $0xdcc] ss:$16 sps:$4 sm:$0xff]  }
 0x23b   : > { %3805 = vmatpush1.bf16.msra.mxu0 %v6136_v19  ;;  %4149 = vmatpush1.bf16.msra.mxu1 %v6139_v20  ;;  %v6226_v19 = vld [vmem:[%s6897_s28 + $0xdc0] ss:$16 sps:$4 sm:$0xff]   ;;  %v6229_v20 = vld [vmem:[%s6897_s28 + $0xdc8] ss:$16 sps:$4 sm:$0xff]  }
 0x23c   : > { %3817 = vmatprep.subr.bf16.mxu0 %v6144_v28  ;;  %4161 = vmatprep.subr.bf16.mxu1 %v6147_v29  ;;  %v6234_v28 = vld [vmem:[%s6897_s28 + $0xde4] ss:$16 sps:$4 sm:$0xff]   ;;  %v6237_v29 = vld [vmem:[%s6897_s28 + $0xdec] ss:$16 sps:$4 sm:$0xff]  }
 0x23e   : > { %3807 = vmatmul.mubr.bf16.vlgmr.msra.gmra.mrb[0].mxu0 %v4807_v30  ;;  %4151 = vmatmul.mubr.bf16.vlgmr.msra.gmra.mrb[0].mxu1 %v4807_v30  ;;  %v6232_v30 = vld [vmem:[%s6897_s28 + $0xde0] ss:$16 sps:$4 sm:$0xff]  }
 0x23f   : > { %3818 = vmatpush1.bf16.msra.mxu0 %v6142_v15  ;;  %4162 = vmatpush1.bf16.msra.mxu1 %v6145_v32  ;;  %v6235_v15 = vld [vmem:[%s6897_s28 + $0xde8] ss:$16 sps:$4 sm:$0xff]   ;;  %v6240_v32 = vld [vmem:[%s6897_s28 + $0xe04] ss:$16 sps:$4 sm:$0xff]  }
 0x240   : > { %3819 = vmatprep.subr.bf16.mxu0 %v6150_v33  ;;  %4163 = vmatprep.subr.bf16.mxu1 %v6153_v34  ;;  %v6243_v33 = vld [vmem:[%s6897_s28 + $0xe0c] ss:$16 sps:$4 sm:$0xff]   ;;  %v4809_v34 = vcombine.low %v7343_v31, %v7345_v22  ;;  %v6244_v22 = vld [vmem:[%s6897_s28 + $0xe20] ss:$16 sps:$4 sm:$0xff]  }
 0x241   : > { %3849 = vmatprep.mubr.bf16.mxu0 %v4810_v26  ;;  %4193 = vmatprep.mubr.bf16.mxu1 %v4810_v26  ;;  %v7415_v26 = vld [vmem:[#allocation3 + $0x38] sm:$0xff] }
 0x243   : > { %3820 = vmatpush1.bf16.msra.mxu0 %v6148_v27  ;;  %4164 = vmatpush1.bf16.msra.mxu1 %v6151_v35  ;;  %v7417_v27 = vld [vmem:[#allocation3 + $0x78] sm:$0xff]  ;;  %v6238_v35 = vld [vmem:[%s6897_s28 + $0xe00] ss:$16 sps:$4 sm:$0xff]  }
 0x244   : > { %3821 = vmatprep.subr.bf16.mxu0 %v6156_v36  ;;  %4165 = vmatprep.subr.bf16.mxu1 %v6159_v37  ;;  %v6241_v36 = vld [vmem:[%s6897_s28 + $0xe08] ss:$16 sps:$4 sm:$0xff]   ;;  %v6246_v37 = vld [vmem:[%s6897_s28 + $0xe24] ss:$16 sps:$4 sm:$0xff]   ;;  %v4812_v31 = vcombine.high %v7415_v26, %v7417_v27 }
 0x247   : > { %3822 = vmatpush1.bf16.msra.mxu0 %v6154_v38  ;;  %4166 = vmatpush1.bf16.msra.mxu1 %v6157_v39  ;;  %v6249_v38 = vld [vmem:[%s6897_s28 + $0xe2c] ss:$16 sps:$4 sm:$0xff]   ;;  %v6247_v39 = vld [vmem:[%s6897_s28 + $0xe28] ss:$16 sps:$4 sm:$0xff]  }
 0x248   : > { %3823 = vmatprep.subr.bf16.mxu0 %v6162_v40  ;;  %4167 = vmatprep.subr.bf16.mxu1 %v6165_v41  ;;  %v6252_v40 = vld [vmem:[%s6897_s28 + $0xe44] ss:$16 sps:$4 sm:$0xff]   ;;  %v6255_v41 = vld [vmem:[%s6897_s28 + $0xe4c] ss:$16 sps:$4 sm:$0xff]  }
 0x24b   : > { %3824 = vmatpush1.bf16.msra.mxu0 %v6160_v42  ;;  %4168 = vmatpush1.bf16.msra.mxu1 %v6163_v43  ;;  %v6250_v42 = vld [vmem:[%s6897_s28 + $0xe40] ss:$16 sps:$4 sm:$0xff]   ;;  %v6253_v43 = vld [vmem:[%s6897_s28 + $0xe48] ss:$16 sps:$4 sm:$0xff]  }
 0x24c   : > { %3825 = vmatprep.subr.bf16.mxu0 %v6168_v44  ;;  %4169 = vmatprep.subr.bf16.mxu1 %v6171_v45  ;;  %v6258_v44 = vld [vmem:[%s6897_s28 + $0xe64] ss:$16 sps:$4 sm:$0xff]   ;;  %v6261_v45 = vld [vmem:[%s6897_s28 + $0xe6c] ss:$16 sps:$4 sm:$0xff]  }
 0x24f   : > { %3826 = vmatpush1.bf16.msra.mxu0 %v6166_v46  ;;  %4170 = vmatpush1.bf16.msra.mxu1 %v6169_v47  ;;  %v6256_v46 = vld [vmem:[%s6897_s28 + $0xe60] ss:$16 sps:$4 sm:$0xff]   ;;  %v6259_v47 = vld [vmem:[%s6897_s28 + $0xe68] ss:$16 sps:$4 sm:$0xff]  }
 0x250   : > { %3827 = vmatprep.subr.bf16.mxu0 %v6174_v48  ;;  %4171 = vmatprep.subr.bf16.mxu1 %v6177_v49  ;;  %v6264_v48 = vld [vmem:[%s6897_s28 + $0xe84] ss:$16 sps:$4 sm:$0xff]   ;;  %v6267_v49 = vld [vmem:[%s6897_s28 + $0xe8c] ss:$16 sps:$4 sm:$0xff]  }
 0x253   : > { %3828 = vmatpush1.bf16.msra.mxu0 %v6172_v50  ;;  %4172 = vmatpush1.bf16.msra.mxu1 %v6175_v51  ;;  %v6262_v50 = vld [vmem:[%s6897_s28 + $0xe80] ss:$16 sps:$4 sm:$0xff]   ;;  %v6265_v51 = vld [vmem:[%s6897_s28 + $0xe88] ss:$16 sps:$4 sm:$0xff]  }
 0x254   : > { %3829 = vmatprep.subr.bf16.mxu0 %v6180_v52  ;;  %4173 = vmatprep.subr.bf16.mxu1 %v6183_v53  ;;  %v6270_v52 = vld [vmem:[%s6897_s28 + $0xea4] ss:$16 sps:$4 sm:$0xff]   ;;  %v6273_v53 = vld [vmem:[%s6897_s28 + $0xeac] ss:$16 sps:$4 sm:$0xff]  }
 0x257   : > { %3830 = vmatpush1.bf16.msra.mxu0 %v6178_v54  ;;  %4174 = vmatpush1.bf16.msra.mxu1 %v6181_v55  ;;  %v6268_v54 = vld [vmem:[%s6897_s28 + $0xea0] ss:$16 sps:$4 sm:$0xff]   ;;  %v6271_v55 = vld [vmem:[%s6897_s28 + $0xea8] ss:$16 sps:$4 sm:$0xff]  }
 0x258   : > { %3831 = vmatprep.subr.bf16.mxu0 %v6186_v56  ;;  %4175 = vmatprep.subr.bf16.mxu1 %v6189_v57  ;;  %v6276_v56 = vld [vmem:[%s6897_s28 + $0xec4] ss:$16 sps:$4 sm:$0xff]   ;;  %v6279_v57 = vld [vmem:[%s6897_s28 + $0xecc] ss:$16 sps:$4 sm:$0xff]  }
 0x25b   : > { %3832 = vmatpush1.bf16.msra.mxu0 %v6184_v58  ;;  %4176 = vmatpush1.bf16.msra.mxu1 %v6187_v59  ;;  %v6274_v58 = vld [vmem:[%s6897_s28 + $0xec0] ss:$16 sps:$4 sm:$0xff]   ;;  %v6277_v59 = vld [vmem:[%s6897_s28 + $0xec8] ss:$16 sps:$4 sm:$0xff]  }
 0x25c   : > { %3833 = vmatprep.subr.bf16.mxu0 %v6192_v60  ;;  %4177 = vmatprep.subr.bf16.mxu1 %v6195_v61  ;;  %v6282_v60 = vld [vmem:[%s6897_s28 + $0xee4] ss:$16 sps:$4 sm:$0xff]   ;;  %v6285_v61 = vld [vmem:[%s6897_s28 + $0xeec] ss:$16 sps:$4 sm:$0xff]  }
 0x25f   : > { %3834 = vmatpush1.bf16.msra.mxu0 %v6190_v62  ;;  %4178 = vmatpush1.bf16.msra.mxu1 %v6193_v63  ;;  %v6280_v62 = vld [vmem:[%s6897_s28 + $0xee0] ss:$16 sps:$4 sm:$0xff]   ;;  %v6283_v63 = vld [vmem:[%s6897_s28 + $0xee8] ss:$16 sps:$4 sm:$0xff]  }
 0x260   : > { %3835 = vmatprep.subr.bf16.mxu0 %v6198_v0  ;;  %4179 = vmatprep.subr.bf16.mxu1 %v6201_v1  ;;  %v6288_v0 = vld [vmem:[%s6897_s28 + $0xf04] ss:$16 sps:$4 sm:$0xff]   ;;  %v6291_v1 = vld [vmem:[%s6897_s28 + $0xf0c] ss:$16 sps:$4 sm:$0xff]  }
 0x263   : > { %3836 = vmatpush1.bf16.msra.mxu0 %v6196_v2  ;;  %4180 = vmatpush1.bf16.msra.mxu1 %v6199_v3  ;;  %v6286_v2 = vld [vmem:[%s6897_s28 + $0xf00] ss:$16 sps:$4 sm:$0xff]   ;;  %v6289_v3 = vld [vmem:[%s6897_s28 + $0xf08] ss:$16 sps:$4 sm:$0xff]  }
 0x264   : > { %3837 = vmatprep.subr.bf16.mxu0 %v6204_v4  ;;  %4181 = vmatprep.subr.bf16.mxu1 %v6207_v5  ;;  %v6294_v4 = vld [vmem:[%s6897_s28 + $0xf24] ss:$16 sps:$4 sm:$0xff]   ;;  %v6297_v5 = vld [vmem:[%s6897_s28 + $0xf2c] ss:$16 sps:$4 sm:$0xff]  }
 0x267   : > { %3838 = vmatpush1.bf16.msra.mxu0 %v6202_v6  ;;  %4182 = vmatpush1.bf16.msra.mxu1 %v6205_v7  ;;  %v6292_v6 = vld [vmem:[%s6897_s28 + $0xf20] ss:$16 sps:$4 sm:$0xff]   ;;  %v6295_v7 = vld [vmem:[%s6897_s28 + $0xf28] ss:$16 sps:$4 sm:$0xff]  }
 0x268   : > { %3839 = vmatprep.subr.bf16.mxu0 %v6210_v8  ;;  %4183 = vmatprep.subr.bf16.mxu1 %v6213_v9  ;;  %v6300_v8 = vld [vmem:[%s6897_s28 + $0xf44] ss:$16 sps:$4 sm:$0xff]   ;;  %v6303_v9 = vld [vmem:[%s6897_s28 + $0xf4c] ss:$16 sps:$4 sm:$0xff]  }
 0x26b   : > { %3840 = vmatpush1.bf16.msra.mxu0 %v6208_v10  ;;  %4184 = vmatpush1.bf16.msra.mxu1 %v6211_v11  ;;  %v6298_v10 = vld [vmem:[%s6897_s28 + $0xf40] ss:$16 sps:$4 sm:$0xff]   ;;  %v6301_v11 = vld [vmem:[%s6897_s28 + $0xf48] ss:$16 sps:$4 sm:$0xff]  }
 0x26c   : > { %3841 = vmatprep.subr.bf16.mxu0 %v6216_v12  ;;  %4185 = vmatprep.subr.bf16.mxu1 %v6219_v13  ;;  %v6306_v12 = vld [vmem:[%s6897_s28 + $0xf64] ss:$16 sps:$4 sm:$0xff]   ;;  %v6309_v13 = vld [vmem:[%s6897_s28 + $0xf6c] ss:$16 sps:$4 sm:$0xff]  }
 0x26f   : > { %3842 = vmatpush1.bf16.msra.mxu0 %v6214_v14  ;;  %4186 = vmatpush1.bf16.msra.mxu1 %v6217_v17  ;;  %v6304_v14 = vld [vmem:[%s6897_s28 + $0xf60] ss:$16 sps:$4 sm:$0xff]   ;;  %v6307_v17 = vld [vmem:[%s6897_s28 + $0xf68] ss:$16 sps:$4 sm:$0xff]  }
 0x270   : > { %3843 = vmatprep.subr.bf16.mxu0 %v6222_v18  ;;  %4187 = vmatprep.subr.bf16.mxu1 %v6225_v21  ;;  %v6312_v18 = vld [vmem:[%s6897_s28 + $0xf84] ss:$16 sps:$4 sm:$0xff]   ;;  %v6315_v21 = vld [vmem:[%s6897_s28 + $0xf8c] ss:$16 sps:$4 sm:$0xff]  }
 0x273   : > { %3844 = vmatpush1.bf16.msra.mxu0 %v6220_v23  ;;  %4188 = vmatpush1.bf16.msra.mxu1 %v6223_v16  ;;  %v6310_v23 = vld [vmem:[%s6897_s28 + $0xf80] ss:$16 sps:$4 sm:$0xff]   ;;  %v6313_v16 = vld [vmem:[%s6897_s28 + $0xf88] ss:$16 sps:$4 sm:$0xff]  }
 0x274   : > { %3845 = vmatprep.subr.bf16.mxu0 %v6228_v24  ;;  %4189 = vmatprep.subr.bf16.mxu1 %v6231_v25  ;;  %v6318_v24 = vld [vmem:[%s6897_s28 + $0xfa4] ss:$16 sps:$4 sm:$0xff]   ;;  %v6321_v25 = vld [vmem:[%s6897_s28 + $0xfac] ss:$16 sps:$4 sm:$0xff]  }
 0x277   : > { %3846 = vmatpush1.bf16.msra.mxu0 %v6226_v19  ;;  %4190 = vmatpush1.bf16.msra.mxu1 %v6229_v20  ;;  %v6316_v19 = vld [vmem:[%s6897_s28 + $0xfa0] ss:$16 sps:$4 sm:$0xff]   ;;  %v6319_v20 = vld [vmem:[%s6897_s28 + $0xfa8] ss:$16 sps:$4 sm:$0xff]  }
 0x278   : > { %3847 = vmatprep.subr.bf16.mxu0 %v6234_v28  ;;  %4191 = vmatprep.subr.bf16.mxu1 %v6237_v29  ;;  %v6324_v28 = vld [vmem:[%s6897_s28 + $0xfc4] ss:$16 sps:$4 sm:$0xff]   ;;  %v6327_v29 = vld [vmem:[%s6897_s28 + $0xfcc] ss:$16 sps:$4 sm:$0xff]  }
 0x27b   : > { %3848 = vmatpush1.bf16.msra.mxu0 %v6232_v30  ;;  %4192 = vmatpush1.bf16.msra.mxu1 %v6235_v15  ;;  %v6322_v30 = vld [vmem:[%s6897_s28 + $0xfc0] ss:$16 sps:$4 sm:$0xff]   ;;  %v6325_v15 = vld [vmem:[%s6897_s28 + $0xfc8] ss:$16 sps:$4 sm:$0xff]  }
 0x27c   : > { %3860 = vmatprep.subr.bf16.mxu0 %v6240_v32  ;;  %4204 = vmatprep.subr.bf16.mxu1 %v6243_v33  ;;  %v6330_v32 = vld [vmem:[%s6897_s28 + $0xfe4] ss:$16 sps:$4 sm:$0xff]   ;;  %v6333_v33 = vld [vmem:[%s6897_s28 + $0xfec] ss:$16 sps:$4 sm:$0xff]  }
 0x27e   : > { %3850 = vmatmul.mubr.bf16.vlgmr.msra.gmra.mrb[0].mxu0 %v4809_v34  ;;  %4194 = vmatmul.mubr.bf16.vlgmr.msra.gmra.mrb[0].mxu1 %v4809_v34  ;;  %v6328_v34 = vld [vmem:[%s6897_s28 + $0xfe0] ss:$16 sps:$4 sm:$0xff]  }
 0x27f   : > { %3861 = vmatpush1.bf16.msra.mxu0 %v6238_v35  ;;  %4205 = vmatpush1.bf16.msra.mxu1 %v6241_v36  ;;  %v6331_v35 = vld [vmem:[%s6897_s28 + $0xfe8] ss:$16 sps:$4 sm:$0xff]  }
 0x280   : > { %3862 = vmatprep.subr.bf16.mxu0 %v6246_v37  ;;  %4206 = vmatprep.subr.bf16.mxu1 %v6249_v38  ;;  %v6334_v36 = vld [vmem:[%s6905_s9 + $0x40] sm:$0xff]   ;;  %v4811_v38 = vcombine.low %v7415_v26, %v7417_v27  ;;  %v6341_v26 = vld [vmem:[%s6905_s9 + $0x88] sm:$0xff]   ;;  %v6342_v27 = vld [vmem:[%s6905_s9 + $0x50] sm:$0xff]  }
 0x281   : > { %3892 = vmatprep.mubr.bf16.mxu0 %v4812_v31  ;;  %4236 = vmatprep.mubr.bf16.mxu1 %v4812_v31  ;;  %v6335_v37 = vld [vmem:[%s6905_s9 + $0xc0] sm:$0xff]  }
 0x282   : > { %v6336_v31 = vld [vmem:[%s6905_s9] sm:$0xff]  }
 0x283   : > { %3863 = vmatpush1.bf16.msra.mxu0 %v6244_v22  ;;  %4207 = vmatpush1.bf16.msra.mxu1 %v6247_v39  ;;  %v6337_v22 = vld [vmem:[%s6905_s9 + $0x80] sm:$0xff]   ;;  %v6338_v39 = vld [vmem:[%s6905_s9 + $0x48] sm:$0xff]  }
 0x284   : > { %3864 = vmatprep.subr.bf16.mxu0 %v6252_v40  ;;  %4208 = vmatprep.subr.bf16.mxu1 %v6255_v41  ;;  %v6339_v40 = vld [vmem:[%s6905_s9 + $0xc8] sm:$0xff]  }
 0x285   : > { %v6340_v41 = vld [vmem:[%s6905_s9 + $0x8] sm:$0xff]  }
 0x287   : > { %3865 = vmatpush1.bf16.msra.mxu0 %v6250_v42  ;;  %4209 = vmatpush1.bf16.msra.mxu1 %v6253_v43  ;;  %v6343_v42 = vld [vmem:[%s6905_s9 + $0xd0] sm:$0xff]  }
 0x288   : > { %3866 = vmatprep.subr.bf16.mxu0 %v6258_v44  ;;  %4210 = vmatprep.subr.bf16.mxu1 %v6261_v45  ;;  %v6344_v43 = vld [vmem:[%s6905_s9 + $0x10] sm:$0xff]   ;;  %v6346_v45 = vld [vmem:[%s6905_s9 + $0x58] sm:$0xff]  }
 0x289   : > { %v6345_v44 = vld [vmem:[%s6905_s9 + $0x90] sm:$0xff]  }
 0x28b   : > { %3867 = vmatpush1.bf16.msra.mxu0 %v6256_v46  ;;  %4211 = vmatpush1.bf16.msra.mxu1 %v6259_v47  ;;  %v6347_v46 = vld [vmem:[%s6905_s9 + $0xd8] sm:$0xff]  }
 0x28c   : > { %3868 = vmatprep.subr.bf16.mxu0 %v6264_v48  ;;  %4212 = vmatprep.subr.bf16.mxu1 %v6267_v49  ;;  %v6348_v47 = vld [vmem:[%s6905_s9 + $0x18] sm:$0xff]   ;;  %v6350_v49 = vld [vmem:[%s6905_s9 + $0x60] sm:$0xff]  }
 0x28d   : > { %v6349_v48 = vld [vmem:[%s6905_s9 + $0x98] sm:$0xff]  }
 0x28f   : > { %3869 = vmatpush1.bf16.msra.mxu0 %v6262_v50  ;;  %4213 = vmatpush1.bf16.msra.mxu1 %v6265_v51  ;;  %v6351_v50 = vld [vmem:[%s6905_s9 + $0xe0] sm:$0xff]  }
 0x290   : > { %3870 = vmatprep.subr.bf16.mxu0 %v6270_v52  ;;  %4214 = vmatprep.subr.bf16.mxu1 %v6273_v53  ;;  %v6352_v51 = vld [vmem:[%s6905_s9 + $0x20] sm:$0xff]   ;;  %v6354_v53 = vld [vmem:[%s6905_s9 + $0x68] sm:$0xff]  }
 0x291   : > { %v6353_v52 = vld [vmem:[%s6905_s9 + $0xa0] sm:$0xff]  }
 0x293   : > { %3871 = vmatpush1.bf16.msra.mxu0 %v6268_v54  ;;  %4215 = vmatpush1.bf16.msra.mxu1 %v6271_v55  ;;  %v6355_v54 = vld [vmem:[%s6905_s9 + $0xe8] sm:$0xff]  }
 0x294   : > { %3872 = vmatprep.subr.bf16.mxu0 %v6276_v56  ;;  %4216 = vmatprep.subr.bf16.mxu1 %v6279_v57  ;;  %v6356_v55 = vld [vmem:[%s6905_s9 + $0x28] sm:$0xff]   ;;  %v6358_v57 = vld [vmem:[%s6905_s9 + $0x70] sm:$0xff]  }
 0x295   : > { %v6357_v56 = vld [vmem:[%s6905_s9 + $0xa8] sm:$0xff]  }
 0x297   : > { %3873 = vmatpush1.bf16.msra.mxu0 %v6274_v58  ;;  %4217 = vmatpush1.bf16.msra.mxu1 %v6277_v59  ;;  %v6359_v58 = vld [vmem:[%s6905_s9 + $0xf0] sm:$0xff]  }
 0x298   : > { %3874 = vmatprep.subr.bf16.mxu0 %v6282_v60  ;;  %4218 = vmatprep.subr.bf16.mxu1 %v6285_v61  ;;  %v6360_v59 = vld [vmem:[%s6905_s9 + $0x30] sm:$0xff]   ;;  %v6362_v61 = vld [vmem:[%s6905_s9 + $0x78] sm:$0xff]  }
 0x299   : > { %v6361_v60 = vld [vmem:[%s6905_s9 + $0xb0] sm:$0xff]  }
 0x29b   : > { %3875 = vmatpush1.bf16.msra.mxu0 %v6280_v62  ;;  %4219 = vmatpush1.bf16.msra.mxu1 %v6283_v63  ;;  %v6363_v62 = vld [vmem:[%s6905_s9 + $0xf8] sm:$0xff]  }
 0x29c   : > { %3876 = vmatprep.subr.bf16.mxu0 %v6288_v0  ;;  %4220 = vmatprep.subr.bf16.mxu1 %v6291_v1  ;;  %v6364_v63 = vld [vmem:[%s6905_s9 + $0x38] sm:$0xff]   ;;  %v899_v1 = vlaneseq }
 0x29d   : > { %v6365_v0 = vld [vmem:[%s6905_s9 + $0xb8] sm:$0xff]  }
 0x29f   : > { %3877 = vmatpush1.bf16.msra.mxu0 %v6286_v2  ;;  %4221 = vmatpush1.bf16.msra.mxu1 %v6289_v3  ;;  %v900_v2 = vshrl.u32 %v899_v1, 7 }
 0x2a0   : > { %3878 = vmatprep.subr.bf16.mxu0 %v6294_v4  ;;  %4222 = vmatprep.subr.bf16.mxu1 %v6297_v5  ;;  %v897_v5 = vld [vmem:[%s6903_s18] sm:$0xf] }
 0x2a1   : > { %v901_v3 = vsub.s32 0, %v900_v2  ;;  %v909_v4 = vsub.s32 2, %v900_v2 }
 0x2a3   : > { %3879 = vmatpush1.bf16.msra.mxu0 %v6292_v6  ;;  %4223 = vmatpush1.bf16.msra.mxu1 %v6295_v7  ;;  %v905_v6 = vsub.s32 1, %v900_v2  ;;  %v913_v7 = vsub.s32 3, %v900_v2 }
 0x2a4   : > { %3880 = vmatprep.subr.bf16.mxu0 %v6300_v8  ;;  %4224 = vmatprep.subr.bf16.mxu1 %v6303_v9  ;;  %v902_v8 = vrot.slane %v897_v5, %v901_v3  ;;  %v910_v9 = vrot.slane %v897_v5, %v909_v4 }
 0x2a7   : > { %3881 = vmatpush1.bf16.msra.mxu0 %v6298_v10  ;;  %4225 = vmatpush1.bf16.msra.mxu1 %v6301_v11  ;;  %v906_v10 = vrot.slane %v897_v5, %v905_v6  ;;  %v914_v11 = vrot.slane %v897_v5, %v913_v7 }
 0x2a8   : > { %3882 = vmatprep.subr.bf16.mxu0 %v6306_v12  ;;  %4226 = vmatprep.subr.bf16.mxu1 %v6309_v13 }
 0x2ab   : > { %3883 = vmatpush1.bf16.msra.mxu0 %v6304_v14  ;;  %4227 = vmatpush1.bf16.msra.mxu1 %v6307_v17 }
 0x2ac   : > { %3884 = vmatprep.subr.bf16.mxu0 %v6312_v18  ;;  %4228 = vmatprep.subr.bf16.mxu1 %v6315_v21 }
 0x2af   : > { %3885 = vmatpush1.bf16.msra.mxu0 %v6310_v23  ;;  %4229 = vmatpush1.bf16.msra.mxu1 %v6313_v16 }
 0x2b0   : > { %3886 = vmatprep.subr.bf16.mxu0 %v6318_v24  ;;  %4230 = vmatprep.subr.bf16.mxu1 %v6321_v25 }
 0x2b3   : > { %3887 = vmatpush1.bf16.msra.mxu0 %v6316_v19  ;;  %4231 = vmatpush1.bf16.msra.mxu1 %v6319_v20 }
 0x2b4   : > { %3888 = vmatprep.subr.bf16.mxu0 %v6324_v28  ;;  %4232 = vmatprep.subr.bf16.mxu1 %v6327_v29 }
 0x2b7   : > { %3889 = vmatpush1.bf16.msra.mxu0 %v6322_v30  ;;  %4233 = vmatpush1.bf16.msra.mxu1 %v6325_v15 }
 0x2b8   : > { %3890 = vmatprep.subr.bf16.mxu0 %v6330_v32  ;;  %4234 = vmatprep.subr.bf16.mxu1 %v6333_v33 }
 0x2bb   : > { %3891 = vmatpush1.bf16.msra.mxu0 %v6328_v34  ;;  %4235 = vmatpush1.bf16.msra.mxu1 %v6331_v35 }
 0x2bc   : > { %5368 = vmatprep.subr.bf16.mxu0 %v6334_v36  ;;  %5390 = vmatprep.subr.bf16.mxu1 %v6335_v37 }
 0x2be   : > { %3893 = vmatmul.mubr.bf16.vlgmr.msra.gmra.mrb[0].mxu0 %v4811_v38  ;;  %4237 = vmatmul.mubr.bf16.vlgmr.msra.gmra.mrb[0].mxu1 %v4811_v38 }
 0x2bf   : > { %5369 = vmatpush3.bf16.msra.mxu0 %v6336_v31  ;;  %5391 = vmatpush3.bf16.msra.mxu1 %v6337_v22 }
 0x2c0   : > { %5370 = vmatprep.subr.bf16.mxu0 %v6338_v39  ;;  %5392 = vmatprep.subr.bf16.mxu1 %v6339_v40 }
 0x2c3   : > { %5371 = vmatpush3.bf16.msra.mxu0 %v6340_v41  ;;  %5393 = vmatpush3.bf16.msra.mxu1 %v6341_v26 }
 0x2c4   : > { %5372 = vmatprep.subr.bf16.mxu0 %v6342_v27  ;;  %5394 = vmatprep.subr.bf16.mxu1 %v6343_v42 }
 0x2c7   : > { %5373 = vmatpush3.bf16.msra.mxu0 %v6344_v43  ;;  %5395 = vmatpush3.bf16.msra.mxu1 %v6345_v44 }
 0x2c8   : > { %5374 = vmatprep.subr.bf16.mxu0 %v6346_v45  ;;  %5396 = vmatprep.subr.bf16.mxu1 %v6347_v46 }
 0x2cb   : > { %5375 = vmatpush3.bf16.msra.mxu0 %v6348_v47  ;;  %5397 = vmatpush3.bf16.msra.mxu1 %v6349_v48  ;;  %v4255_v48 = vld [vmem:[#allocation2] sm:$0xff] }
 0x2cc   : > { %5376 = vmatprep.subr.bf16.mxu0 %v6350_v49  ;;  %5398 = vmatprep.subr.bf16.mxu1 %v6351_v50 }
 0x2cf   : > { %5377 = vmatpush3.bf16.msra.mxu0 %v6352_v51  ;;  %5399 = vmatpush3.bf16.msra.mxu1 %v6353_v52 }
 0x2d0   : > { %5378 = vmatprep.subr.bf16.mxu0 %v6354_v53  ;;  %5400 = vmatprep.subr.bf16.mxu1 %v6355_v54  ;;  %v4256_v54 = vld [vmem:[#allocation2 + $0x8] sm:$0xff] }
 0x2d3   : > { %5379 = vmatpush3.bf16.msra.mxu0 %v6356_v55  ;;  %5401 = vmatpush3.bf16.msra.mxu1 %v6357_v56 }
 0x2d4   : > { %5380 = vmatprep.subr.bf16.mxu0 %v6358_v57  ;;  %5402 = vmatprep.subr.bf16.mxu1 %v6359_v58 }
 0x2d7   : > { %5381 = vmatpush3.bf16.msra.mxu0 %v6360_v59  ;;  %5403 = vmatpush3.bf16.msra.mxu1 %v6361_v60  ;;  %v5358_v59 = vld [vmem:[#allocation11] ss:$0 sm:$0xff] (!%p5357_p8) }
 0x2d8   : > { %5382 = vmatprep.subr.bf16.mxu0 %v6362_v61  ;;  %5404 = vmatprep.subr.bf16.mxu1 %v6363_v62 }
 0x2db   : > { %5383 = vmatpush3.bf16.msra.mxu0 %v6364_v63  ;;  %5405 = vmatpush3.bf16.msra.mxu1 %v6365_v0 }
 0x391   : > { %v3894_v12 = vpop.f32.mrb[0].mxu0  ;;  %v4238_v13 = vpop.f32.mrb[0].mxu1 }
 0x392   : > { %v5412_v14 = vadd.f32 %v3894_v12, %v902_v8  ;;  %v5416_v17 = vadd.f32 %v4238_v13, %v910_v9  ;;  %v3896_v18 = vpop.f32.mrb[1].mxu0  ;;  %v4240_v21 = vpop.f32.mrb[1].mxu1 }
 0x393   : > { %v5413_v23 = vadd.f32 %v3896_v18, %v906_v10  ;;  %v5417_v16 = vadd.f32 %v4240_v21, %v914_v11  ;;  %v3898_v24 = vpop.f32.mrb[2].mxu0  ;;  %v4242_v25 = vpop.f32.mrb[2].mxu1 }
 0x394   : > { %v5414_v19 = vadd.f32 %v3898_v24, %v902_v8  ;;  %v5418_v20 = vadd.f32 %v4242_v25, %v910_v9  ;;  %v3900_v28 = vpop.f32.mrb[3].mxu0  ;;  %v4244_v29 = vpop.f32.mrb[3].mxu1  ;;  %v4247_v32 = vmax.f32 %v5412_v14, 0.0  ;;  %v4249_v33 = vmax.f32 %v5416_v17, 0.0 }
 0x395   : > { %v5415_v30 = vadd.f32 %v3900_v28, %v906_v10  ;;  %v5419_v15 = vadd.f32 %v4244_v29, %v914_v11  ;;  %v4248_v36 = vmax.f32 %v5413_v23, 0.0  ;;  %v4250_v37 = vmax.f32 %v5417_v16, 0.0 }
 0x396   : > { %v4251_v34 = vmax.f32 %v5414_v19, 0.0  ;;  %v4253_v35 = vmax.f32 %v5418_v20, 0.0 }
 0x397   : > { %v4252_v38 = vmax.f32 %v5415_v30, 0.0  ;;  %v4254_v31 = vmax.f32 %v5419_v15, 0.0 }
 0x398   : > { %v4257_v22 = vpack.c.bf16 %v4251_v34, %v4247_v32  ;;  %v4259_v39 = vpack.c.bf16 %v4253_v35, %v4249_v33 }
 0x399   : > { %v4258_v40 = vpack.c.bf16 %v4252_v38, %v4248_v36  ;;  %v4260_v41 = vpack.c.bf16 %v4254_v31, %v4250_v37 }
 0x39b   : > { %4549 = vmatprep.mubr.bf16.mxu0 %v4258_v40  ;;  %4590 = vmatprep.mubr.bf16.mxu1 %v4260_v41 }
 0x39c   : > { %4550 = vmatmul.mubr.bf16.vlgmr.msra.gmra.mrb[4].mxu0 %v4257_v22  ;;  %4591 = vmatmul.mubr.bf16.vlgmr.msra.gmra.mrb[4].mxu1 %v4259_v39 }
 0x46f   : > { %v5384_v26 = vpop.f32.mrb[4].mxu0  ;;  %v5406_v27 = vpop.f32.mrb[4].mxu1 }
 0x470   : > { %v5385_v42 = vpop.f32.mrb[5].mxu0  ;;  %v5407_v43 = vpop.f32.mrb[5].mxu1 }
 0x471   : > { %v5386_v44 = vadd.f32 %v5385_v42, %v5384_v26  ;;  %v5408_v45 = vadd.f32 %v5407_v43, %v5406_v27  ;;  %v5387_v46 = vpop.f32.mrb[6].mxu0  ;;  %v5409_v47 = vpop.f32.mrb[6].mxu1 }
 0x472   : > { %v5388_v49 = vpop.f32.mrb[7].mxu0  ;;  %v5410_v50 = vpop.f32.mrb[7].mxu1 }
 0x473   : > { %v4593_v51 = vadd.f32 %v5408_v45, %v5386_v44  ;;  %v5389_v52 = vadd.f32 %v5388_v49, %v5387_v46  ;;  %v5411_v53 = vadd.f32 %v5410_v50, %v5409_v47  ;;  %4606 = sbr.rel (%p5357_p8) target bundleno = 1317 (0x525), region = 68 }
 0x475   : > { %v4599_v55 = vadd.f32 %v4593_v51, %v4255_v48  ;;  %v4596_v56 = vadd.f32 %v5411_v53, %v5389_v52 }
 0x477   : > { %4601 = vst [vmem:[#allocation2] sm:$0xff] %v4599_v55  ;;  %v4600_v57 = vadd.f32 %v4596_v56, %v4256_v54 }
 0x479   : > { %4602 = vst [vmem:[#allocation2 + $0x8] sm:$0xff] %v4600_v57 }
 0x47e   : > { %v4607_v58 = vld [vmem:[#allocation2] sm:$0xff] }
 0x47f   : > { %v4616_v61 = vadd.f32 %v5358_v59, %v4607_v58 }
 0x480   : > { %v4608_v60 = vld [vmem:[#allocation2 + $0x8] sm:$0xff] }
 0x481   : > { %v4617_v62 = vadd.f32 %v5358_v59, %v4608_v60  ;;  %v4618_v63 = vmul.f32 %v4616_v61, %v4616_v61 }
 0x483   : > { %4620 = vadd.xlane.f32.xlu0 %v4618_v63  ;;  %v4619_v0 = vmul.f32 %v4617_v62, %v4617_v62 }
 0x487   : > { %4622 = vadd.xlane.f32.xlu0 %v4619_v0 }
 0x510   : > { %v4621_v1 = vpop.xlane.xlu0 %4620 }
 0x511   : > { %v4624_v2 = vmax.f32 %v4621_v1, 1e-24 }
 0x513   : > { %6366 = vrsqrt.f32 %v4624_v2 }
 0x514   : > { %v4623_v3 = vpop.xlane.xlu0 %4622 }
 0x515   : > { %v4625_v4 = vmax.f32 %v4623_v3, 1e-24 }
 0x517   : > { %6368 = vrsqrt.f32 %v4625_v4 }
 0x51d   : > { %v6367_v5 = vpop.eup %6366 }
 0x51e   : > { %v4628_v6 = vmul.f32 %v6367_v5, %v4616_v61 }
 0x520   : > { %v4630_v7 = vpack.c.bf16 %v4628_v6, %v4628_v6 }
 0x521   : > { %v6369_v8 = vpop.eup %6368 }
 0x522   : > { %4631 = vst [vmem:[#allocation12] sm:$0xf] %v4630_v7  ;;  %v4629_v9 = vmul.f32 %v6369_v8, %v4617_v62 }
 0x524   : > { %4632 = vst [vmem:[#allocation13] sm:$0xff] %v4629_v9 }
 0x525 PF: > { %p5520_p13 = scmp.eq.s32.totalorder %s6691_s25, 3  ;;  %s6635_s7 = smov [#allocation12]  }
 0x526   : > { %s4640_s19 = sshll.u32 %s6635_s7, 4  ;;  %s6636_s12 = smov [#allocation13]   ;;  %s4641_s19 = int_to_ptr.vmem [resolvable:$true] %s4640_s19 }
 0x527   : > { %s4651_s14 = sshll.u32 %s6636_s12, 4  ;;  %s6516_s27 = scalar_lea.vmem %s4641_s19, 64  ;;  %s4652_s14 = int_to_ptr.vmem [resolvable:$true] %s4651_s14 }
 0x528   : > { %p6517_p2 = scmp.ne.s32.totalorder %s4641_s19, %s6516_s27  ;;  %p6523_p12 = scmp.lt.s32.totalorder %s4641_s19, %s4641_s19 }
 0x529   : > { %p6524_p5 = scmp.lt.s32.totalorder %s6516_s27, %s6516_s27 }
 0x52a   : > { %p6518_p6 = pnand %p6517_p2, %p5520_p13 }
 0x52b   : > { %p6525_p9 = por %p6524_p5, %p6523_p12 }
 0x52c   : > { %p6519_p7 = pneg %p6518_p6 }
 0x52e   : > { %p6526_p11 = pnand %p6525_p9, %p6519_p7 }
 0x530   : > { %6529 = shalt.err (!%p6526_p11)
}
 0x531   : > { %s6530_s4 = scalar_lea.hbm %s7582_s5, 64 }
 0x532   : > { %p6531_p10 = scmp.ne.s32.totalorder %s7582_s5, %s6530_s4  ;;  %p6536_p3 = scmp.lt.u32.totalorder %s6530_s4, %s7582_s5 }
 0x534   : > { %p6532_p1 = pnand %p6531_p10, %p5520_p13 }
 0x536   : > { %p6533_p4 = pneg %p6532_p1 }
 0x538   : > { %p6538_p0 = pnand %p6536_p3, %p6533_p4 }
 0x53a   : > { %6541 = shalt.err (!%p6538_p0)
}
 0x53b   : > { %5491 = dma.vmem_to_hbm [thread:$0]  (%p5520_p13), %s4641_s19, 64, %s7582_s5, [#allocation5]  }
 0x53c   : > { %s6542_s13 = scalar_lea.vmem %s4652_s14, 128  ;;  %p6549_p7 = scmp.lt.s32.totalorder %s4652_s14, %s4652_s14 }
 0x53d   : > { %p6543_p8 = scmp.ne.s32.totalorder %s4652_s14, %s6542_s13  ;;  %p6550_p12 = scmp.lt.s32.totalorder %s6542_s13, %s6542_s13 }
 0x53f   : > { %p6544_p2 = pnand %p6543_p8, %p5520_p13  ;;  %p6551_p5 = por %p6550_p12, %p6549_p7 }
 0x541   : > { %p6545_p6 = pneg %p6544_p2 }
 0x543   : > { %p6552_p9 = pnand %p6551_p5, %p6545_p6 }
 0x545   : > { %6555 = shalt.err (!%p6552_p9)
}
 0x546   : > { %s6556_s28 = scalar_lea.hbm %s7583_s6, 128 }
 0x547   : > { %p6557_p11 = scmp.ne.s32.totalorder %s7583_s6, %s6556_s28  ;;  %p6562_p4 = scmp.lt.u32.totalorder %s6556_s28, %s7583_s6 }
 0x549   : > { %p6558_p10 = pnand %p6557_p11, %p5520_p13 }
 0x54b   : > { %p6559_p1 = pneg %p6558_p10 }
 0x54d   : > { %p6564_p3 = pnand %p6562_p4, %p6559_p1 }
 0x54f   : > { %6567 = shalt.err (!%p6564_p3)
}
 0x550   : > { %5493 = dma.vmem_to_hbm [thread:$0]  (%p5520_p13), %s4652_s14, 128, %s7583_s6, [#allocation14]  }
 0x551   : > { %6601 = dma.done.wait (%p5520_p13), [#allocation5], 64  }
 0x552   : > { %6603 = vsyncadd (%p5520_p13), [#allocation5], 4294967232 }
 0x553   : > { %6605 = dma.done.wait (%p5520_p13), [#allocation14], 128  }
 0x554   : > { %6607 = vsyncadd (%p5520_p13), [#allocation14], 4294967168 }
 0x555 PF: > { %s7622_s19 = sld [smem:[#allocation21_spill]]  ;;  %s7623_s23 = sld [smem:[#allocation22_spill]] }
 0x556   : > { %p23_p0 = scmp.ge.s32.totalorder %s6694_s26, 6   ;;  %s7624_s21 = smov %s6614_s22 }
 0x557   : > { %s7626_s24 = smov %s6694_s26 }
 0x558   :  { %25 = sbr.rel (!%p23_p0) target bundleno = 11 (0xb), region = 126 }
 0x55b   : > { %s7625_s22 = smov %s7622_s19 }
 0x55f   :  { %4668 = vsyncpa [#allocation4], 1 }
 0x560   :  { %4670 = vsyncpa [#allocation4 + $0x1], 1 }
 0x561   :  { %4671 = vsyncpa [#allocation7], 1 }
 0x562   :  { %4673 = vsyncpa [#allocation7 + $0x1], 1 }
 0x563   :  { %4674 = vsyncpa [#allocation10], 1 }
 0x564   :  { %4676 = vsyncpa [#allocation10 + $0x1], 1 }
 0x565   :  { %4677 = vsyncpa [#allocation5], 1 }
 0x566   :  { %4679 = vsyncpa [#allocation5 + $0x1], 1 }
 0x567   :  { %4680 = vsyncpa [#allocation14], 1 }

</bundles_post_ra>
